<compile_context>
chip_gen: v7x
topology: tpu7x:2x2x1
jax: 0.10.0
libtpu: 0.0.40
codegen_flags: <defaults>
</compile_context>

<pallas_src>
import math

import jax
import jax.numpy as jnp
from jax.experimental import pallas as pl
from jax.experimental.pallas import tpu as pltpu

# ---- Model hyperparameters (SepConv1D defaults) -----------------------------
CHANS = 6
SAMPLES = 206
FILTERS = 32
KSIZE = 16
STRIDE = 8
PAD = 4
OUT_LEN = (SAMPLES + 2 * PAD - KSIZE) // STRIDE + 1      # T = 25
NFRAMES = OUT_LEN + 1                                    # 26 stride-8 frames cover all windows
CS = STRIDE * CHANS                                      # 48 values per frame
B_BLK = 128                                              # batch elements per grid step (lane axis)

assert KSIZE == 2 * STRIDE, "frame decomposition requires kernel == 2 * stride"


# ---- Pallas kernel: full forward for one batch block ------------------------
def sepconv1d_kernel(xf_ref, wlo_ref, whi_ref, beff_ref, wcls_ref, bcls_ref, o_ref):
    # xf_ref:   (CS, NFRAMES*b_blk) bf16  frame tensor; column = frame*b_blk + b (batch on lanes)
    # wlo_ref:  (FILTERS, CS) bf16        fused depthwise*pointwise weights, taps 0..7
    # whi_ref:  (FILTERS, CS) bf16        fused weights, taps 8..15
    # beff_ref: (FILTERS, 1) f32          fused bias (b_pw + W_pw @ b_dw)
    # wcls_ref: (FILTERS, OUT_LEN) f32    classifier weight (PyTorch f-major flatten)
    # bcls_ref: (1, 1) f32 in SMEM        classifier bias
    # o_ref:    (1, b_blk) f32            lane-dense sigmoid outputs for this batch block
    b_blk = o_ref.shape[-1]
    t_len = wcls_ref.shape[-1]
    tw = t_len * b_blk

    # Fused depthwise+pointwise conv: window t = frames (t, t+1) -> two MXU matmuls over
    # shifted lane-aligned slices of the frame tensor, accumulated in f32.
    z = jnp.dot(wlo_ref[...], xf_ref[:, 0:tw], preferred_element_type=jnp.float32)
    z = z + jnp.dot(whi_ref[...], xf_ref[:, b_blk:b_blk + tw],
                    preferred_element_type=jnp.float32)
    a = jnp.tanh(z + beff_ref[...])                        # (FILTERS, T*b_blk), f32

    # Classifier: per-time-step weight (lane broadcast of a (F,1) column) fused into the add
    # chain, then one sublane reduction over filters.  All slices lane-tile aligned (b_blk%128==0).
    acc = a[:, 0:b_blk] * wcls_ref[:, 0:1]
    for t in range(1, t_len):                              # static, unrolled, hidden under DMA
        acc = acc + a[:, t * b_blk:(t + 1) * b_blk] * wcls_ref[:, t:t + 1]
    logit = jnp.sum(acc, axis=0, keepdims=True) + bcls_ref[0, 0]    # (1, b_blk)

    # Numerically stable sigmoid.
    ez = jnp.exp(-jnp.abs(logit))
    o_ref[...] = jnp.where(logit >= 0.0, 1.0 / (1.0 + ez), ez / (1.0 + ez))


# ---- Wrapper -----------------------------------------------------------------
def sepconv1d_forward(x, params, b_blk=B_BLK):
    """x: (B, SAMPLES, CHANS) float32 — same tensor the PyTorch module receives."""
    w_dw, b_dw, w_pw, b_pw, w_cls, b_cls = params
    assert b_blk % 128 == 0, "batch block must keep the batch axis lane-tile aligned"
    B = x.shape[0]
    nb = -(-B // b_blk)
    bp = nb * b_blk

    # Glue: non-duplicating frame tensor (batch on lanes).  Padded samples actually used by the
    # conv are [0, NFRAMES*STRIDE): PAD leading zeros then x[:, :NFRAMES*STRIDE - PAD].
    n_used = NFRAMES * STRIDE - PAD                                    # 204
    xp = jnp.pad(x[:, :n_used, :], ((0, bp - B), (PAD, 0), (0, 0)))    # (bp, 208, C)
    xf = xp.reshape(bp, NFRAMES, CS)                                   # xf[b, f, s*C + c]
    xf = xf.reshape(nb, b_blk, NFRAMES, CS).transpose(0, 3, 2, 1)      # (nb, CS, NFRAMES, b_blk)
    xf = xf.reshape(nb, CS, NFRAMES * b_blk).astype(jnp.bfloat16)      # col = f*b_blk + b

    # Glue: fuse depthwise+pointwise weights/bias; split into the two 8-tap halves.
    wdw2 = w_dw[:, 0, :]                                               # (C, K)
    wpw2 = w_pw[:, :, 0]                                               # (F, C)
    wcomb = (wpw2[:, None, :] * wdw2.T[None, :, :]).reshape(FILTERS, KSIZE * CHANS)
    w_lo = wcomb[:, :CS].astype(jnp.bfloat16)                          # taps 0..7
    w_hi = wcomb[:, CS:].astype(jnp.bfloat16)                          # taps 8..15
    beff = (b_pw + wpw2 @ b_dw).reshape(FILTERS, 1)
    wcls_ft = w_cls.reshape(FILTERS, OUT_LEN)                          # PyTorch flatten is f-major
    bcls = b_cls.reshape(1, 1)

    # VMEM budget: double-buffered bf16 frame block + a few f32 (F, T*b_blk) intermediates.
    vmem_limit = 2 * (CS * NFRAMES * b_blk * 2) + 8 * (FILTERS * OUT_LEN * b_blk * 4) + (4 << 20)
    vmem_limit = int(min(max(vmem_limit, 32 << 20), 64 << 20))

    out = pl.pallas_call(
        sepconv1d_kernel,
        out_shape=jax.ShapeDtypeStruct((nb, 1, b_blk), jnp.float32),
        grid_spec=pltpu.PrefetchScalarGridSpec(
            num_scalar_prefetch=0,
            grid=(nb,),
            in_specs=[
                pl.BlockSpec((None, CS, NFRAMES * b_blk), lambda i: (i, 0, 0)),
                pl.BlockSpec((FILTERS, CS), lambda i: (0, 0)),
                pl.BlockSpec((FILTERS, CS), lambda i: (0, 0)),
                pl.BlockSpec((FILTERS, 1), lambda i: (0, 0)),
                pl.BlockSpec((FILTERS, OUT_LEN), lambda i: (0, 0)),
                pl.BlockSpec(memory_space=pltpu.MemorySpace.SMEM),     # scalar classifier bias
            ],
            out_specs=pl.BlockSpec((None, 1, b_blk), lambda i: (i, 0, 0)),
        ),
        compiler_params=pltpu.CompilerParams(
            # TODO(synk): on v7x, try pltpu.CORE_PARALLEL here (with nb >= 2) to split batch
            # blocks across the two TensorCores.
            dimension_semantics=("parallel",),
            vmem_limit_bytes=vmem_limit),
    )(xf, w_lo, w_hi, beff, wcls_ft, bcls)

    return out.reshape(nb * b_blk, 1)[:B]


# ---- Deterministic parameter init (PyTorch-native shapes) --------------------
def init_params(key):
    k1, k2, k3, k4, k5, k6 = jax.random.split(key, 6)
    s_dw = 1.0 / math.sqrt(1 * KSIZE)
    s_pw = 1.0 / math.sqrt(CHANS * 1)
    s_cl = 1.0 / math.sqrt(FILTERS * OUT_LEN)
    w_dw = jax.random.uniform(k1, (CHANS, 1, KSIZE), jnp.float32, -s_dw, s_dw)
    b_dw = jax.random.uniform(k2, (CHANS,), jnp.float32, -s_dw, s_dw)
    w_pw = jax.random.uniform(k3, (FILTERS, CHANS, 1), jnp.float32, -s_pw, s_pw)
    b_pw = jax.random.uniform(k4, (FILTERS,), jnp.float32, -s_pw, s_pw)
    w_cls = jax.random.uniform(k5, (1, FILTERS * OUT_LEN), jnp.float32, -s_cl, s_cl)
    b_cls = jax.random.uniform(k6, (1,), jnp.float32, -s_cl, s_cl)
    return (w_dw, b_dw, w_pw, b_pw, w_cls, b_cls)


# ---- Pure-JAX reference (mirrors the PyTorch graph, full f32) -----------------
def sepconv1d_reference(x, params):
    w_dw, b_dw, w_pw, b_pw, w_cls, b_cls = params
    xt = jnp.transpose(x, (0, 2, 1))                                  # (B, C, S)
    xp = jnp.pad(xt, ((0, 0), (0, 0), (PAD, PAD)))
    wins = jnp.stack(
        [xp[:, :, STRIDE * t:STRIDE * t + KSIZE] for t in range(OUT_LEN)], axis=2)
    dw = jnp.einsum('bctk,ck->bct', wins, w_dw[:, 0, :]) + b_dw[None, :, None]
    pw = jnp.einsum('fc,bct->bft', w_pw[:, :, 0], dw) + b_pw[None, :, None]
    a = jnp.tanh(pw)
    flat = a.reshape(x.shape[0], -1)                                  # (B, F*T), f-major
    logit = flat @ w_cls.T + b_cls[None, :]
    return jax.nn.sigmoid(logit)


if __name__ == "__main__":
    key = jax.random.PRNGKey(0)
    kx, kp = jax.random.split(key)
    B = 2
    x = jax.random.normal(kx, (B, SAMPLES, CHANS), jnp.float32)
    params = init_params(kp)

    fwd = jax.jit(sepconv1d_forward)
    out = jax.block_until_ready(fwd(x, params))
    ref = jax.block_until_ready(sepconv1d_reference(x, params))

    assert out.shape == (B, 1), out.shape
    # Tolerance relaxed vs the f32 version because the conv inputs/weights are streamed in bf16.
    assert jnp.allclose(out, ref, atol=1e-2, rtol=1e-2), (out, ref)
    print("KERNEL_OK")
</pallas_src>

<mosaic_0001>
module attributes {stable_mosaic.version = 11 : i64} {
  func.func @sepconv1d_kernel(%arg0: i32, %arg1: memref<1x48x3328xbf16, #tpu.memory_space<vmem>>, %arg2: memref<32x48xbf16, #tpu.memory_space<vmem>>, %arg3: memref<32x48xbf16, #tpu.memory_space<vmem>>, %arg4: memref<32x1xf32, #tpu.memory_space<vmem>>, %arg5: memref<32x25xf32, #tpu.memory_space<vmem>>, %arg6: memref<1x1xf32, #tpu.memory_space<smem>>, %arg7: memref<1x1x128xf32, #tpu.memory_space<vmem>>) attributes {dimension_semantics = [#tpu.dimension_semantics<parallel>], iteration_bounds = array<i64: 1>, scalar_prefetch = 0 : i64, scratch_operands = 0 : i64, tpu.core_type = #tpu.core_type<tc>, window_params = [{transform_indices = @transform_0, window_bounds = array<i64: 1, 48, 3328>}, {pipeline_mode = #tpu.pipeline_mode<synchronous>, transform_indices = @transform_1, window_bounds = array<i64: 32, 48>}, {pipeline_mode = #tpu.pipeline_mode<synchronous>, transform_indices = @transform_2, window_bounds = array<i64: 32, 48>}, {pipeline_mode = #tpu.pipeline_mode<synchronous>, transform_indices = @transform_3, window_bounds = array<i64: 32, 1>}, {pipeline_mode = #tpu.pipeline_mode<synchronous>, transform_indices = @transform_4, window_bounds = array<i64: 32, 25>}, {transform_indices = @transform_5, window_bounds = array<i64: 1, 1>}, {transform_indices = @transform_6, window_bounds = array<i64: 1, 1, 128>}]} {
    %c0 = arith.constant 0 : index
    %c0_0 = arith.constant 0 : index
    %0 = vector.load %arg2[%c0, %c0_0] : memref<32x48xbf16, #tpu.memory_space<vmem>>, vector<32x48xbf16>
    %c0_1 = arith.constant 0 : index
    %c0_2 = arith.constant 0 : index
    %c0_3 = arith.constant 0 : index
    %1 = vector.load %arg1[%c0_1, %c0_2, %c0_3] : memref<1x48x3328xbf16, #tpu.memory_space<vmem>>, vector<1x48x3200xbf16>
    %2 = vector.shape_cast %1 : vector<1x48x3200xbf16> to vector<48x3200xbf16>
    %cst = arith.constant dense<0.000000e+00> : vector<32x3200xf32>
    %3 = tpu.matmul %0, %2, %cst {dimension_numbers = #tpu.dot_dimension_numbers<[1], [0], [0], [1], [0, 0, 1, 1], [], []>} : vector<32x48xbf16>, vector<48x3200xbf16>, vector<32x3200xf32> -> vector<32x3200xf32>
    %c0_4 = arith.constant 0 : index
    %c0_5 = arith.constant 0 : index
    %4 = vector.load %arg3[%c0_4, %c0_5] : memref<32x48xbf16, #tpu.memory_space<vmem>>, vector<32x48xbf16>
    %c0_6 = arith.constant 0 : index
    %c0_7 = arith.constant 0 : index
    %c128 = arith.constant 128 : index
    %5 = vector.load %arg1[%c0_6, %c0_7, %c128] : memref<1x48x3328xbf16, #tpu.memory_space<vmem>>, vector<1x48x3200xbf16>
    %6 = vector.shape_cast %5 : vector<1x48x3200xbf16> to vector<48x3200xbf16>
    %cst_8 = arith.constant dense<0.000000e+00> : vector<32x3200xf32>
    %7 = tpu.matmul %4, %6, %cst_8 {dimension_numbers = #tpu.dot_dimension_numbers<[1], [0], [0], [1], [0, 0, 1, 1], [], []>} : vector<32x48xbf16>, vector<48x3200xbf16>, vector<32x3200xf32> -> vector<32x3200xf32>
    %8 = arith.addf %3, %7 : vector<32x3200xf32>
    %c0_9 = arith.constant 0 : index
    %c0_10 = arith.constant 0 : index
    %9 = vector.load %arg4[%c0_9, %c0_10] : memref<32x1xf32, #tpu.memory_space<vmem>>, vector<32x1xf32>
    %10 = vector.broadcast %9 : vector<32x1xf32> to vector<32x3200xf32>
    %11 = arith.addf %8, %10 : vector<32x3200xf32>
    %12 = math.tanh %11 : vector<32x3200xf32>
    %13 = vector.extract_strided_slice %12 {offsets = [0, 0], sizes = [32, 128], strides = [1, 1]} : vector<32x3200xf32> to vector<32x128xf32>
    %c0_11 = arith.constant 0 : index
    %c0_12 = arith.constant 0 : index
    %14 = vector.load %arg5[%c0_11, %c0_12] : memref<32x25xf32, #tpu.memory_space<vmem>>, vector<32x1xf32>
    %15 = vector.broadcast %14 : vector<32x1xf32> to vector<32x128xf32>
    %16 = arith.mulf %13, %15 : vector<32x128xf32>
    %17 = vector.extract_strided_slice %12 {offsets = [0, 128], sizes = [32, 128], strides = [1, 1]} : vector<32x3200xf32> to vector<32x128xf32>
    %c0_13 = arith.constant 0 : index
    %c1 = arith.constant 1 : index
    %18 = vector.load %arg5[%c0_13, %c1] : memref<32x25xf32, #tpu.memory_space<vmem>>, vector<32x1xf32>
    %19 = vector.broadcast %18 : vector<32x1xf32> to vector<32x128xf32>
    %20 = arith.mulf %17, %19 : vector<32x128xf32>
    %21 = arith.addf %16, %20 : vector<32x128xf32>
    %22 = vector.extract_strided_slice %12 {offsets = [0, 256], sizes = [32, 128], strides = [1, 1]} : vector<32x3200xf32> to vector<32x128xf32>
    %c0_14 = arith.constant 0 : index
    %c2 = arith.constant 2 : index
    %23 = vector.load %arg5[%c0_14, %c2] : memref<32x25xf32, #tpu.memory_space<vmem>>, vector<32x1xf32>
    %24 = vector.broadcast %23 : vector<32x1xf32> to vector<32x128xf32>
    %25 = arith.mulf %22, %24 : vector<32x128xf32>
    %26 = arith.addf %21, %25 : vector<32x128xf32>
    %27 = vector.extract_strided_slice %12 {offsets = [0, 384], sizes = [32, 128], strides = [1, 1]} : vector<32x3200xf32> to vector<32x128xf32>
    %c0_15 = arith.constant 0 : index
    %c3 = arith.constant 3 : index
    %28 = vector.load %arg5[%c0_15, %c3] : memref<32x25xf32, #tpu.memory_space<vmem>>, vector<32x1xf32>
    %29 = vector.broadcast %28 : vector<32x1xf32> to vector<32x128xf32>
    %30 = arith.mulf %27, %29 : vector<32x128xf32>
    %31 = arith.addf %26, %30 : vector<32x128xf32>
    %32 = vector.extract_strided_slice %12 {offsets = [0, 512], sizes = [32, 128], strides = [1, 1]} : vector<32x3200xf32> to vector<32x128xf32>
    %c0_16 = arith.constant 0 : index
    %c4 = arith.constant 4 : index
    %33 = vector.load %arg5[%c0_16, %c4] : memref<32x25xf32, #tpu.memory_space<vmem>>, vector<32x1xf32>
    %34 = vector.broadcast %33 : vector<32x1xf32> to vector<32x128xf32>
    %35 = arith.mulf %32, %34 : vector<32x128xf32>
    %36 = arith.addf %31, %35 : vector<32x128xf32>
    %37 = vector.extract_strided_slice %12 {offsets = [0, 640], sizes = [32, 128], strides = [1, 1]} : vector<32x3200xf32> to vector<32x128xf32>
    %c0_17 = arith.constant 0 : index
    %c5 = arith.constant 5 : index
    %38 = vector.load %arg5[%c0_17, %c5] : memref<32x25xf32, #tpu.memory_space<vmem>>, vector<32x1xf32>
    %39 = vector.broadcast %38 : vector<32x1xf32> to vector<32x128xf32>
    %40 = arith.mulf %37, %39 : vector<32x128xf32>
    %41 = arith.addf %36, %40 : vector<32x128xf32>
    %42 = vector.extract_strided_slice %12 {offsets = [0, 768], sizes = [32, 128], strides = [1, 1]} : vector<32x3200xf32> to vector<32x128xf32>
    %c0_18 = arith.constant 0 : index
    %c6 = arith.constant 6 : index
    %43 = vector.load %arg5[%c0_18, %c6] : memref<32x25xf32, #tpu.memory_space<vmem>>, vector<32x1xf32>
    %44 = vector.broadcast %43 : vector<32x1xf32> to vector<32x128xf32>
    %45 = arith.mulf %42, %44 : vector<32x128xf32>
    %46 = arith.addf %41, %45 : vector<32x128xf32>
    %47 = vector.extract_strided_slice %12 {offsets = [0, 896], sizes = [32, 128], strides = [1, 1]} : vector<32x3200xf32> to vector<32x128xf32>
    %c0_19 = arith.constant 0 : index
    %c7 = arith.constant 7 : index
    %48 = vector.load %arg5[%c0_19, %c7] : memref<32x25xf32, #tpu.memory_space<vmem>>, vector<32x1xf32>
    %49 = vector.broadcast %48 : vector<32x1xf32> to vector<32x128xf32>
    %50 = arith.mulf %47, %49 : vector<32x128xf32>
    %51 = arith.addf %46, %50 : vector<32x128xf32>
    %52 = vector.extract_strided_slice %12 {offsets = [0, 1024], sizes = [32, 128], strides = [1, 1]} : vector<32x3200xf32> to vector<32x128xf32>
    %c0_20 = arith.constant 0 : index
    %c8 = arith.constant 8 : index
    %53 = vector.load %arg5[%c0_20, %c8] : memref<32x25xf32, #tpu.memory_space<vmem>>, vector<32x1xf32>
    %54 = vector.broadcast %53 : vector<32x1xf32> to vector<32x128xf32>
    %55 = arith.mulf %52, %54 : vector<32x128xf32>
    %56 = arith.addf %51, %55 : vector<32x128xf32>
    %57 = vector.extract_strided_slice %12 {offsets = [0, 1152], sizes = [32, 128], strides = [1, 1]} : vector<32x3200xf32> to vector<32x128xf32>
    %c0_21 = arith.constant 0 : index
    %c9 = arith.constant 9 : index
    %58 = vector.load %arg5[%c0_21, %c9] : memref<32x25xf32, #tpu.memory_space<vmem>>, vector<32x1xf32>
    %59 = vector.broadcast %58 : vector<32x1xf32> to vector<32x128xf32>
    %60 = arith.mulf %57, %59 : vector<32x128xf32>
    %61 = arith.addf %56, %60 : vector<32x128xf32>
    %62 = vector.extract_strided_slice %12 {offsets = [0, 1280], sizes = [32, 128], strides = [1, 1]} : vector<32x3200xf32> to vector<32x128xf32>
    %c0_22 = arith.constant 0 : index
    %c10 = arith.constant 10 : index
    %63 = vector.load %arg5[%c0_22, %c10] : memref<32x25xf32, #tpu.memory_space<vmem>>, vector<32x1xf32>
    %64 = vector.broadcast %63 : vector<32x1xf32> to vector<32x128xf32>
    %65 = arith.mulf %62, %64 : vector<32x128xf32>
    %66 = arith.addf %61, %65 : vector<32x128xf32>
    %67 = vector.extract_strided_slice %12 {offsets = [0, 1408], sizes = [32, 128], strides = [1, 1]} : vector<32x3200xf32> to vector<32x128xf32>
    %c0_23 = arith.constant 0 : index
    %c11 = arith.constant 11 : index
    %68 = vector.load %arg5[%c0_23, %c11] : memref<32x25xf32, #tpu.memory_space<vmem>>, vector<32x1xf32>
    %69 = vector.broadcast %68 : vector<32x1xf32> to vector<32x128xf32>
    %70 = arith.mulf %67, %69 : vector<32x128xf32>
    %71 = arith.addf %66, %70 : vector<32x128xf32>
    %72 = vector.extract_strided_slice %12 {offsets = [0, 1536], sizes = [32, 128], strides = [1, 1]} : vector<32x3200xf32> to vector<32x128xf32>
    %c0_24 = arith.constant 0 : index
    %c12 = arith.constant 12 : index
    %73 = vector.load %arg5[%c0_24, %c12] : memref<32x25xf32, #tpu.memory_space<vmem>>, vector<32x1xf32>
    %74 = vector.broadcast %73 : vector<32x1xf32> to vector<32x128xf32>
    %75 = arith.mulf %72, %74 : vector<32x128xf32>
    %76 = arith.addf %71, %75 : vector<32x128xf32>
    %77 = vector.extract_strided_slice %12 {offsets = [0, 1664], sizes = [32, 128], strides = [1, 1]} : vector<32x3200xf32> to vector<32x128xf32>
    %c0_25 = arith.constant 0 : index
    %c13 = arith.constant 13 : index
    %78 = vector.load %arg5[%c0_25, %c13] : memref<32x25xf32, #tpu.memory_space<vmem>>, vector<32x1xf32>
    %79 = vector.broadcast %78 : vector<32x1xf32> to vector<32x128xf32>
    %80 = arith.mulf %77, %79 : vector<32x128xf32>
    %81 = arith.addf %76, %80 : vector<32x128xf32>
    %82 = vector.extract_strided_slice %12 {offsets = [0, 1792], sizes = [32, 128], strides = [1, 1]} : vector<32x3200xf32> to vector<32x128xf32>
    %c0_26 = arith.constant 0 : index
    %c14 = arith.constant 14 : index
    %83 = vector.load %arg5[%c0_26, %c14] : memref<32x25xf32, #tpu.memory_space<vmem>>, vector<32x1xf32>
    %84 = vector.broadcast %83 : vector<32x1xf32> to vector<32x128xf32>
    %85 = arith.mulf %82, %84 : vector<32x128xf32>
    %86 = arith.addf %81, %85 : vector<32x128xf32>
    %87 = vector.extract_strided_slice %12 {offsets = [0, 1920], sizes = [32, 128], strides = [1, 1]} : vector<32x3200xf32> to vector<32x128xf32>
    %c0_27 = arith.constant 0 : index
    %c15 = arith.constant 15 : index
    %88 = vector.load %arg5[%c0_27, %c15] : memref<32x25xf32, #tpu.memory_space<vmem>>, vector<32x1xf32>
    %89 = vector.broadcast %88 : vector<32x1xf32> to vector<32x128xf32>
    %90 = arith.mulf %87, %89 : vector<32x128xf32>
    %91 = arith.addf %86, %90 : vector<32x128xf32>
    %92 = vector.extract_strided_slice %12 {offsets = [0, 2048], sizes = [32, 128], strides = [1, 1]} : vector<32x3200xf32> to vector<32x128xf32>
    %c0_28 = arith.constant 0 : index
    %c16 = arith.constant 16 : index
    %93 = vector.load %arg5[%c0_28, %c16] : memref<32x25xf32, #tpu.memory_space<vmem>>, vector<32x1xf32>
    %94 = vector.broadcast %93 : vector<32x1xf32> to vector<32x128xf32>
    %95 = arith.mulf %92, %94 : vector<32x128xf32>
    %96 = arith.addf %91, %95 : vector<32x128xf32>
    %97 = vector.extract_strided_slice %12 {offsets = [0, 2176], sizes = [32, 128], strides = [1, 1]} : vector<32x3200xf32> to vector<32x128xf32>
    %c0_29 = arith.constant 0 : index
    %c17 = arith.constant 17 : index
    %98 = vector.load %arg5[%c0_29, %c17] : memref<32x25xf32, #tpu.memory_space<vmem>>, vector<32x1xf32>
    %99 = vector.broadcast %98 : vector<32x1xf32> to vector<32x128xf32>
    %100 = arith.mulf %97, %99 : vector<32x128xf32>
    %101 = arith.addf %96, %100 : vector<32x128xf32>
    %102 = vector.extract_strided_slice %12 {offsets = [0, 2304], sizes = [32, 128], strides = [1, 1]} : vector<32x3200xf32> to vector<32x128xf32>
    %c0_30 = arith.constant 0 : index
    %c18 = arith.constant 18 : index
    %103 = vector.load %arg5[%c0_30, %c18] : memref<32x25xf32, #tpu.memory_space<vmem>>, vector<32x1xf32>
    %104 = vector.broadcast %103 : vector<32x1xf32> to vector<32x128xf32>
    %105 = arith.mulf %102, %104 : vector<32x128xf32>
    %106 = arith.addf %101, %105 : vector<32x128xf32>
    %107 = vector.extract_strided_slice %12 {offsets = [0, 2432], sizes = [32, 128], strides = [1, 1]} : vector<32x3200xf32> to vector<32x128xf32>
    %c0_31 = arith.constant 0 : index
    %c19 = arith.constant 19 : index
    %108 = vector.load %arg5[%c0_31, %c19] : memref<32x25xf32, #tpu.memory_space<vmem>>, vector<32x1xf32>
    %109 = vector.broadcast %108 : vector<32x1xf32> to vector<32x128xf32>
    %110 = arith.mulf %107, %109 : vector<32x128xf32>
    %111 = arith.addf %106, %110 : vector<32x128xf32>
    %112 = vector.extract_strided_slice %12 {offsets = [0, 2560], sizes = [32, 128], strides = [1, 1]} : vector<32x3200xf32> to vector<32x128xf32>
    %c0_32 = arith.constant 0 : index
    %c20 = arith.constant 20 : index
    %113 = vector.load %arg5[%c0_32, %c20] : memref<32x25xf32, #tpu.memory_space<vmem>>, vector<32x1xf32>
    %114 = vector.broadcast %113 : vector<32x1xf32> to vector<32x128xf32>
    %115 = arith.mulf %112, %114 : vector<32x128xf32>
    %116 = arith.addf %111, %115 : vector<32x128xf32>
    %117 = vector.extract_strided_slice %12 {offsets = [0, 2688], sizes = [32, 128], strides = [1, 1]} : vector<32x3200xf32> to vector<32x128xf32>
    %c0_33 = arith.constant 0 : index
    %c21 = arith.constant 21 : index
    %118 = vector.load %arg5[%c0_33, %c21] : memref<32x25xf32, #tpu.memory_space<vmem>>, vector<32x1xf32>
    %119 = vector.broadcast %118 : vector<32x1xf32> to vector<32x128xf32>
    %120 = arith.mulf %117, %119 : vector<32x128xf32>
    %121 = arith.addf %116, %120 : vector<32x128xf32>
    %122 = vector.extract_strided_slice %12 {offsets = [0, 2816], sizes = [32, 128], strides = [1, 1]} : vector<32x3200xf32> to vector<32x128xf32>
    %c0_34 = arith.constant 0 : index
    %c22 = arith.constant 22 : index
    %123 = vector.load %arg5[%c0_34, %c22] : memref<32x25xf32, #tpu.memory_space<vmem>>, vector<32x1xf32>
    %124 = vector.broadcast %123 : vector<32x1xf32> to vector<32x128xf32>
    %125 = arith.mulf %122, %124 : vector<32x128xf32>
    %126 = arith.addf %121, %125 : vector<32x128xf32>
    %127 = vector.extract_strided_slice %12 {offsets = [0, 2944], sizes = [32, 128], strides = [1, 1]} : vector<32x3200xf32> to vector<32x128xf32>
    %c0_35 = arith.constant 0 : index
    %c23 = arith.constant 23 : index
    %128 = vector.load %arg5[%c0_35, %c23] : memref<32x25xf32, #tpu.memory_space<vmem>>, vector<32x1xf32>
    %129 = vector.broadcast %128 : vector<32x1xf32> to vector<32x128xf32>
    %130 = arith.mulf %127, %129 : vector<32x128xf32>
    %131 = arith.addf %126, %130 : vector<32x128xf32>
    %132 = vector.extract_strided_slice %12 {offsets = [0, 3072], sizes = [32, 128], strides = [1, 1]} : vector<32x3200xf32> to vector<32x128xf32>
    %c0_36 = arith.constant 0 : index
    %c24 = arith.constant 24 : index
    %133 = vector.load %arg5[%c0_36, %c24] : memref<32x25xf32, #tpu.memory_space<vmem>>, vector<32x1xf32>
    %134 = vector.broadcast %133 : vector<32x1xf32> to vector<32x128xf32>
    %135 = arith.mulf %132, %134 : vector<32x128xf32>
    %136 = arith.addf %131, %135 : vector<32x128xf32>
    %cst_37 = arith.constant dense<0.000000e+00> : vector<128xf32>
    %137 = vector.multi_reduction <add>, %136, %cst_37 [0] : vector<32x128xf32> to vector<128xf32>
    %138 = vector.shape_cast %137 : vector<128xf32> to vector<1x128xf32>
    %c0_38 = arith.constant 0 : index
    %c0_39 = arith.constant 0 : index
    %139 = memref.load %arg6[%c0_38, %c0_39] : memref<1x1xf32, #tpu.memory_space<smem>>
    %140 = vector.broadcast %139 : f32 to vector<1x128xf32>
    %141 = arith.addf %138, %140 : vector<1x128xf32>
    %142 = math.absf %141 : vector<1x128xf32>
    %cst_40 = arith.constant 0.000000e+00 : f32
    %143 = vector.broadcast %cst_40 : f32 to vector<1x128xf32>
    %144 = arith.subf %143, %142 : vector<1x128xf32>
    %145 = math.exp %144 : vector<1x128xf32>
    %cst_41 = arith.constant 0.000000e+00 : f32
    %146 = vector.broadcast %cst_41 : f32 to vector<1x128xf32>
    %147 = arith.cmpf oge, %141, %146 : vector<1x128xf32>
    %cst_42 = arith.constant 1.000000e+00 : f32
    %148 = vector.broadcast %cst_42 : f32 to vector<1x128xf32>
    %149 = arith.addf %148, %145 : vector<1x128xf32>
    %cst_43 = arith.constant 1.000000e+00 : f32
    %150 = vector.broadcast %cst_43 : f32 to vector<1x128xf32>
    %151 = arith.divf %150, %149 : vector<1x128xf32>
    %cst_44 = arith.constant 1.000000e+00 : f32
    %152 = vector.broadcast %cst_44 : f32 to vector<1x128xf32>
    %153 = arith.addf %152, %145 : vector<1x128xf32>
    %154 = arith.divf %145, %153 : vector<1x128xf32>
    %155 = arith.select %147, %151, %154 : vector<1x128xi1>, vector<1x128xf32>
    %c0_45 = arith.constant 0 : index
    %c0_46 = arith.constant 0 : index
    %c0_47 = arith.constant 0 : index
    %156 = vector.load %arg7[%c0_45, %c0_46, %c0_47] : memref<1x1x128xf32, #tpu.memory_space<vmem>>, vector<1x1x128xf32>
    %157 = vector.shape_cast %156 : vector<1x1x128xf32> to vector<1x128xf32>
    %158 = vector.shape_cast %155 : vector<1x128xf32> to vector<1x1x128xf32>
    tpu.vector_store %arg7[%c0_45, %c0_46, %c0_47], %158 {strides = array<i32>} : memref<1x1x128xf32, #tpu.memory_space<vmem>>, vector<1x1x128xf32>,
    return
  }
  func.func @transform_0(%arg0: i32) -> (i32, i32, i32) {
    %c0_i32 = arith.constant 0 : i32
    %c0_i32_0 = arith.constant 0 : i32
    %c0_i32_1 = arith.constant 0 : i32
    return %arg0, %c0_i32, %c0_i32_0 : i32, i32, i32
  }
  func.func @transform_1(%arg0: i32) -> (i32, i32) {
    %c0_i32 = arith.constant 0 : i32
    %c0_i32_0 = arith.constant 0 : i32
    %c0_i32_1 = arith.constant 0 : i32
    return %c0_i32, %c0_i32_0 : i32, i32
  }
  func.func @transform_2(%arg0: i32) -> (i32, i32) {
    %c0_i32 = arith.constant 0 : i32
    %c0_i32_0 = arith.constant 0 : i32
    %c0_i32_1 = arith.constant 0 : i32
    return %c0_i32, %c0_i32_0 : i32, i32
  }
  func.func @transform_3(%arg0: i32) -> (i32, i32) {
    %c0_i32 = arith.constant 0 : i32
    %c0_i32_0 = arith.constant 0 : i32
    %c0_i32_1 = arith.constant 0 : i32
    return %c0_i32, %c0_i32_0 : i32, i32
  }
  func.func @transform_4(%arg0: i32) -> (i32, i32) {
    %c0_i32 = arith.constant 0 : i32
    %c0_i32_0 = arith.constant 0 : i32
    %c0_i32_1 = arith.constant 0 : i32
    return %c0_i32, %c0_i32_0 : i32, i32
  }
  func.func @transform_5(%arg0: i32) -> (i32, i32) {
    %c0_i32 = arith.constant 0 : i32
    %c0_i32_0 = arith.constant 0 : i32
    %c0_i32_1 = arith.constant 0 : i32
    return %c0_i32, %c0_i32_0 : i32, i32
  }
  func.func @transform_6(%arg0: i32) -> (i32, i32, i32) {
    %c0_i32 = arith.constant 0 : i32
    %c0_i32_0 = arith.constant 0 : i32
    %c0_i32_1 = arith.constant 0 : i32
    return %arg0, %c0_i32, %c0_i32_0 : i32, i32, i32
  }
}

</mosaic_0001>

<bundles_post_ra>
// kernel: sepconv1d_forward.1
= control target key start
LH: loop header
LB: loop body
LE: loop exit
PB: predicated region body
PF: predicated region fallthrough
CT: control target
= control target key end

     0   :  { %v4061_v1 = vmov 0   ;;  %vm577_vm0 = vcmask 392192   ;;  %v4062_v35 = vmov 1   ;;  %v4063_v46 = vmov 2   ;;  %s5368_s0 = inlined_call_operand.vmem [shape: bf16[1,48,3328], index: 0, kind: input, shape index: {}]   ;;  %s5369_s3 = inlined_call_operand.vmem [shape: f32[32,1], index: 3, kind: input, shape index: {}]   ;;  %s5370_s2 = inlined_call_operand.vmem [shape: bf16[32,48], index: 2, kind: input, shape index: {}]   ;;  %s5371_s4 = inlined_call_operand.vmem [shape: f32[32,25], index: 4, kind: input, shape index: {}]   ;;  %s5372_s1 = inlined_call_operand.vmem [shape: bf16[32,48], index: 1, kind: input, shape index: {}]   ;;  %s5373_s5 = inlined_call_operand.<no memory space> [shape: f32[1,1], index: 5, kind: input, shape index: {}]   ;;  %s5374_s6 = inlined_call_operand.vmem [shape: f32[1,1,128], index: 6, kind: output, shape index: {}]  }
   0x1   :  { %v3627_v0 = vld [vmem:[%s5368_s0 + $0x8] ss:$104 sps:$4 sm:$0xff]   ;;  %3565 = vset.pattern.permute.xlu1 %v4061_v1  ;;  %616 = vmatprep.mubr.bf16.mxu0 %v4061_v1  ;;  %v3631_v3 = vld [vmem:[%s5368_s0 + $0x4] ss:$104 sps:$4 sm:$0xff]   ;;  %v3633_v5 = vld [vmem:[%s5368_s0 + $0xd8] ss:$104 sps:$4 sm:$0xff]  }
   0x2   :  { %v3629_v2 = vld [vmem:[%s5368_s0 + $0x10] ss:$104 sps:$4 sm:$0xff]   ;;  %669 = vmatprep.mubr.bf16.mxu1 %v4061_v1  ;;  %3564 = vset.pattern.permute.xlu0 %v4061_v1  ;;  %v3632_v4 = vld [vmem:[%s5368_s0 + $0xc] ss:$104 sps:$4 sm:$0xff]   ;;  %v3635_v6 = vld [vmem:[%s5368_s0 + $0xe0] ss:$104 sps:$4 sm:$0xff]  }
   0x3   :  { %584 = vmatprep.subr.bf16.mxu0 %v3627_v0  ;;  %637 = vmatprep.subr.bf16.mxu1 %v3629_v2  ;;  %v3637_v7 = vld [vmem:[%s5368_s0 + $0xd4] ss:$104 sps:$4 sm:$0xff]   ;;  %v3639_v9 = vld [vmem:[%s5368_s0 + $0x1a8] ss:$104 sps:$4 sm:$0xff]   ;;  %v3643_v11 = vld [vmem:[%s5368_s0 + $0x1a4] ss:$104 sps:$4 sm:$0xff]  }
   0x4   :  { %585 = vmatpush1.bf16.msra.mxu0 %v3631_v3  ;;  %638 = vmatpush1.bf16.msra.mxu1 %v3632_v4  ;;  %v3638_v8 = vld [vmem:[%s5368_s0 + $0xdc] ss:$104 sps:$4 sm:$0xff]   ;;  %v3641_v10 = vld [vmem:[%s5368_s0 + $0x1b0] ss:$104 sps:$4 sm:$0xff]   ;;  %v3644_v12 = vld [vmem:[%s5368_s0 + $0x1ac] ss:$104 sps:$4 sm:$0xff]  }
   0x5   :  { %586 = vmatprep.subr.bf16.mxu0 %v3633_v5  ;;  %639 = vmatprep.subr.bf16.mxu1 %v3635_v6  ;;  %v2350_v13 = vld [vmem:[%s5369_s3 + $0x10] sm:$0xff]  ;;  %v4167_v14 = vld [vmem:[%s5370_s2] sm:$0xff]   ;;  %v2351_v19 = vld [vmem:[%s5369_s3 + $0x18] sm:$0xff]  ;;  %v4064_v59 = vmov 3   ;;  %v4065_v2 = vmov 4  }
   0x6   :  { %2364 = vperm.xlu1 %3565, %v2350_v13   ;;  %v3648_v15 = vld [vmem:[%s5368_s0 + $0x18] ss:$104 sps:$4 sm:$0xff]   ;;  %v3646_v16 = vld [vmem:[%s5368_s0 + $0x14] ss:$104 sps:$4 sm:$0xff]   ;;  %v3654_v20 = vld [vmem:[%s5368_s0 + $0xe8] ss:$104 sps:$4 sm:$0xff]  }
   0x7   :  { %v3651_v17 = vld [vmem:[%s5368_s0 + $0x20] ss:$104 sps:$4 sm:$0xff]   ;;  %v3649_v18 = vld [vmem:[%s5368_s0 + $0x1c] ss:$104 sps:$4 sm:$0xff]   ;;  %v3657_v22 = vld [vmem:[%s5368_s0 + $0xf0] ss:$104 sps:$4 sm:$0xff]  }
   0x8   :  { %587 = vmatpush1.bf16.msra.mxu0 %v3637_v7  ;;  %640 = vmatpush1.bf16.msra.mxu1 %v3638_v8  ;;  %v4190_v21 = vld [vmem:[%s5371_s4 + $0x8] sm:$0xff]  ;;  %v3661_v26 = vld [vmem:[%s5368_s0 + $0x1b8] ss:$104 sps:$4 sm:$0xff]   ;;  %v3659_v29 = vld [vmem:[%s5368_s0 + $0x1b4] ss:$104 sps:$4 sm:$0xff]  }
   0x9   :  { %588 = vmatprep.subr.bf16.mxu0 %v3639_v9  ;;  %641 = vmatprep.subr.bf16.mxu1 %v3641_v10  ;;  %v3652_v23 = vld [vmem:[%s5368_s0 + $0xe4] ss:$104 sps:$4 sm:$0xff]   ;;  %v4218_v27 = vld [vmem:[%s5371_s4 + $0x18] sm:$0xff]  ;;  %v3664_v28 = vld [vmem:[%s5368_s0 + $0x1c0] ss:$104 sps:$4 sm:$0xff]  }
   0xa   :  { %2369 = vperm.xlu1 %3565, %v2351_v19   ;;  %v3655_v24 = vld [vmem:[%s5368_s0 + $0xec] ss:$104 sps:$4 sm:$0xff]   ;;  %v3662_v30 = vld [vmem:[%s5368_s0 + $0x1bc] ss:$104 sps:$4 sm:$0xff]   ;;  %v3667_v31 = vld [vmem:[%s5368_s0 + $0x28] ss:$104 sps:$4 sm:$0xff]  }
   0xb   :  { %v4208_v25 = vld [vmem:[%s5370_s2 + $0x8] sm:$0xff]   ;;  %v3670_v32 = vld [vmem:[%s5368_s0 + $0x30] ss:$104 sps:$4 sm:$0xff]   ;;  %v3671_v38 = vld [vmem:[%s5368_s0 + $0xf4] ss:$104 sps:$4 sm:$0xff]  }
   0xc   :  { %589 = vmatpush1.bf16.msra.mxu0 %v3643_v11  ;;  %642 = vmatpush1.bf16.msra.mxu1 %v3644_v12  ;;  %v3665_v33 = vld [vmem:[%s5368_s0 + $0x24] ss:$104 sps:$4 sm:$0xff]   ;;  %v3673_v36 = vld [vmem:[%s5368_s0 + $0xf8] ss:$104 sps:$4 sm:$0xff]   ;;  %v4270_v40 = vld [vmem:[%s5371_s4 + $0x10] sm:$0xff] }
   0xd   :  { %690 = vmatprep.subr.bf16.mxu0 %v3648_v15  ;;  %743 = vmatprep.subr.bf16.mxu1 %v3651_v17  ;;  %v3668_v34 = vld [vmem:[%s5368_s0 + $0x2c] ss:$104 sps:$4 sm:$0xff]   ;;  %v3676_v37 = vld [vmem:[%s5368_s0 + $0x100] ss:$104 sps:$4 sm:$0xff]   ;;  %v3674_v39 = vld [vmem:[%s5368_s0 + $0xfc] ss:$104 sps:$4 sm:$0xff]  }
   0xe   :  { %2583 = vperm.xlu1 %3565, %v4190_v21   ;;  %v3679_v41 = vld [vmem:[%s5368_s0 + $0x1c8] ss:$104 sps:$4 sm:$0xff]   ;;  %v3677_v43 = vld [vmem:[%s5368_s0 + $0x1c4] ss:$104 sps:$4 sm:$0xff]   ;;  %v3685_v47 = vld [vmem:[%s5368_s0 + $0x38] ss:$104 sps:$4 sm:$0xff]  }
   0xf   :  { %3280 = vmatmul.mubr.msk.bf16.vlgmr.msra.gmra.mrb[0].mxu0 %vm577_vm0, %v4167_v14  ;;  %3282 = vmatmul.mubr.msk.bf16.vlgmr.msra.gmra.mrb[0].mxu1 %vm577_vm0, %v4167_v14  ;;  %v3682_v42 = vld [vmem:[%s5368_s0 + $0x1d0] ss:$104 sps:$4 sm:$0xff]   ;;  %v3680_v44 = vld [vmem:[%s5368_s0 + $0x1cc] ss:$104 sps:$4 sm:$0xff]   ;;  %v4290_v45 = vld [vmem:[%s5371_s4] sm:$0xff]  ;;  %v4066_v17 = vmov 5  }
  0x10   :  { %691 = vmatpush1.bf16.msra.mxu0 %v3646_v16  ;;  %744 = vmatpush1.bf16.msra.mxu1 %v3649_v18  ;;  %v3688_v48 = vld [vmem:[%s5368_s0 + $0x40] ss:$104 sps:$4 sm:$0xff]   ;;  %v3683_v49 = vld [vmem:[%s5368_s0 + $0x34] ss:$104 sps:$4 sm:$0xff]   ;;  %v3694_v52 = vld [vmem:[%s5368_s0 + $0x110] ss:$104 sps:$4 sm:$0xff]  }
  0x11   :  { %692 = vmatprep.subr.bf16.mxu0 %v3654_v20  ;;  %745 = vmatprep.subr.bf16.mxu1 %v3657_v22  ;;  %v3686_v50 = vld [vmem:[%s5368_s0 + $0x3c] ss:$104 sps:$4 sm:$0xff]   ;;  %v3691_v51 = vld [vmem:[%s5368_s0 + $0x108] ss:$104 sps:$4 sm:$0xff]   ;;  %v3692_v54 = vld [vmem:[%s5368_s0 + $0x10c] ss:$104 sps:$4 sm:$0xff]  }
  0x12   :  { %626 = vmatprep.mubr.bf16.mxu0 %v4061_v1  ;;  %679 = vmatprep.mubr.bf16.mxu1 %v4061_v1  ;;  %v3689_v53 = vld [vmem:[%s5368_s0 + $0x104] ss:$104 sps:$4 sm:$0xff]   ;;  %v3697_v55 = vld [vmem:[%s5368_s0 + $0x1d8] ss:$104 sps:$4 sm:$0xff]   ;;  %v3695_v57 = vld [vmem:[%s5368_s0 + $0x1d4] ss:$104 sps:$4 sm:$0xff]  }
  0x13   :  { %2593 = vperm.xlu1 %3565, %v4218_v27   ;;  %v3700_v56 = vld [vmem:[%s5368_s0 + $0x1e0] ss:$104 sps:$4 sm:$0xff]   ;;  %v3698_v58 = vld [vmem:[%s5368_s0 + $0x1dc] ss:$104 sps:$4 sm:$0xff]   ;;  %v3706_v61 = vld [vmem:[%s5368_s0 + $0x50] ss:$104 sps:$4 sm:$0xff]  }
  0x14   :  { %693 = vmatpush1.bf16.msra.mxu0 %v3652_v23  ;;  %746 = vmatpush1.bf16.msra.mxu1 %v3655_v24  ;;  %v3703_v60 = vld [vmem:[%s5368_s0 + $0x48] ss:$104 sps:$4 sm:$0xff]   ;;  %v3701_v62 = vld [vmem:[%s5368_s0 + $0x44] ss:$104 sps:$4 sm:$0xff]   ;;  %v3709_v0 = vld [vmem:[%s5368_s0 + $0x118] ss:$104 sps:$4 sm:$0xff]  }
  0x15   :  { %694 = vmatprep.subr.bf16.mxu0 %v3661_v26  ;;  %747 = vmatprep.subr.bf16.mxu1 %v3664_v28  ;;  %v3704_v63 = vld [vmem:[%s5368_s0 + $0x4c] ss:$104 sps:$4 sm:$0xff]   ;;  %v3712_v3 = vld [vmem:[%s5368_s0 + $0x120] ss:$104 sps:$4 sm:$0xff]   ;;  %v3710_v5 = vld [vmem:[%s5368_s0 + $0x11c] ss:$104 sps:$4 sm:$0xff]  }
  0x16   :  { %v3707_v4 = vld [vmem:[%s5368_s0 + $0x114] ss:$104 sps:$4 sm:$0xff]   ;;  %v3715_v6 = vld [vmem:[%s5368_s0 + $0x1e8] ss:$104 sps:$4 sm:$0xff]   ;;  %v3713_v8 = vld [vmem:[%s5368_s0 + $0x1e4] ss:$104 sps:$4 sm:$0xff]  }
  0x17   :  { %3281 = vmatmul.mubr.msk.bf16.gmra.mrb[4].mxu0 %vm577_vm0, %v4208_v25  ;;  %3283 = vmatmul.mubr.msk.bf16.gmra.mrb[4].mxu1 %vm577_vm0, %v4208_v25  ;;  %v3718_v7 = vld [vmem:[%s5368_s0 + $0x1f0] ss:$104 sps:$4 sm:$0xff]   ;;  %v2348_v9 = vld [vmem:[%s5369_s3] sm:$0xff]  ;;  %v3716_v10 = vld [vmem:[%s5368_s0 + $0x1ec] ss:$104 sps:$4 sm:$0xff]  }
  0x18   :  { %695 = vmatpush1.bf16.msra.mxu0 %v3659_v29  ;;  %748 = vmatpush1.bf16.msra.mxu1 %v3662_v30  ;;  %v3721_v11 = vld [vmem:[%s5368_s0 + $0x58] ss:$104 sps:$4 sm:$0xff]   ;;  %v2349_v13 = vld [vmem:[%s5369_s3 + $0x8] sm:$0xff]  ;;  %v3719_v15 = vld [vmem:[%s5368_s0 + $0x54] ss:$104 sps:$4 sm:$0xff]   ;;  %v4067_v29 = vmov 6  }
  0x19   :  { %722 = vmatprep.mubr.bf16.mxu0 %v4061_v1  ;;  %775 = vmatprep.mubr.bf16.mxu1 %v4061_v1  ;;  %v3724_v12 = vld [vmem:[%s5368_s0 + $0x60] ss:$104 sps:$4 sm:$0xff]   ;;  %v3722_v16 = vld [vmem:[%s5368_s0 + $0x5c] ss:$104 sps:$4 sm:$0xff]   ;;  %v3730_v19 = vld [vmem:[%s5368_s0 + $0x130] ss:$104 sps:$4 sm:$0xff]  }
  0x1a   :  { %796 = vmatprep.subr.bf16.mxu0 %v3667_v31  ;;  %849 = vmatprep.subr.bf16.mxu1 %v3670_v32  ;;  %v3727_v18 = vld [vmem:[%s5368_s0 + $0x128] ss:$104 sps:$4 sm:$0xff]   ;;  %v3725_v20 = vld [vmem:[%s5368_s0 + $0x124] ss:$104 sps:$4 sm:$0xff]   ;;  %v3733_v23 = vld [vmem:[%s5368_s0 + $0x1f8] ss:$104 sps:$4 sm:$0xff]  }
  0x1b   :  { %3567 = vset.pattern.permute.xlu1 %v4062_v35  ;;  %2354 = vperm.xlu0 %3564, %v2348_v9   ;;  %v3728_v22 = vld [vmem:[%s5368_s0 + $0x12c] ss:$104 sps:$4 sm:$0xff]   ;;  %v3736_v24 = vld [vmem:[%s5368_s0 + $0x200] ss:$104 sps:$4 sm:$0xff]   ;;  %v3734_v28 = vld [vmem:[%s5368_s0 + $0x1fc] ss:$104 sps:$4 sm:$0xff]  }
  0x1c   :  { %2605 = vperm.xlu1 %3567, %v4190_v21   ;;  %v3731_v26 = vld [vmem:[%s5368_s0 + $0x1f4] ss:$104 sps:$4 sm:$0xff]   ;;  %v3737_v30 = vld [vmem:[%s5368_s0 + $0x64] ss:$104 sps:$4 sm:$0xff]   ;;  %v3738_v32 = vld [vmem:[%s5368_s0] ss:$104 sps:$4 sm:$0xff]  }
  0x1d   :  { %v3740_v31 = vld [vmem:[%s5368_s0 + $0x4] ss:$104 sps:$4 sm:$0xff]   ;;  %v3787_v9 = vld [vmem:[%s5368_s0 + $0x28] ss:$104 sps:$4 sm:$0xff]  }
  0x1f   :  { %3284 = vmatmul.mubr.msk.bf16.vlgmr.msra.gmra.mrb[8].mxu0 %vm577_vm0, %v4167_v14  ;;  %3286 = vmatmul.mubr.msk.bf16.vlgmr.msra.gmra.mrb[8].mxu1 %vm577_vm0, %v4167_v14 }
  0x20   :  { %797 = vmatpush1.bf16.msra.mxu0 %v3665_v33  ;;  %850 = vmatpush1.bf16.msra.mxu1 %v3668_v34  ;;  %v3744_v33 = vld [vmem:[%s5368_s0 + $0xd4] ss:$104 sps:$4 sm:$0xff]  }
  0x21   :  { %798 = vmatprep.subr.bf16.mxu0 %v3673_v36  ;;  %851 = vmatprep.subr.bf16.mxu1 %v3676_v37  ;;  %v3741_v34 = vld [vmem:[%s5368_s0 + $0x134] ss:$104 sps:$4 sm:$0xff]   ;;  %v3742_v36 = vld [vmem:[%s5368_s0 + $0xd0] ss:$104 sps:$4 sm:$0xff]   ;;  %v3748_v37 = vld [vmem:[%s5368_s0 + $0x1a4] ss:$104 sps:$4 sm:$0xff]  }
  0x22   :  { %2609 = vperm.xlu1 %3567, %v4270_v40   ;;  %732 = vmatprep.mubr.bf16.mxu0 %v4061_v1 }
  0x23   :  { %785 = vmatprep.mubr.bf16.mxu1 %v4061_v1  ;;  %2359 = vperm.xlu0 %3564, %v2349_v13  }
  0x24   :  { %799 = vmatpush1.bf16.msra.mxu0 %v3671_v38  ;;  %852 = vmatpush1.bf16.msra.mxu1 %v3674_v39  ;;  %v3745_v38 = vld [vmem:[%s5368_s0 + $0x204] ss:$104 sps:$4 sm:$0xff]   ;;  %v4068_v39 = vmov 7  }
  0x25   :  { %800 = vmatprep.subr.bf16.mxu0 %v3679_v41  ;;  %853 = vmatprep.subr.bf16.mxu1 %v3682_v42  ;;  %v3746_v41 = vld [vmem:[%s5368_s0 + $0x1a0] ss:$104 sps:$4 sm:$0xff]   ;;  %v3751_v42 = vld [vmem:[%s5368_s0 + $0xc] ss:$104 sps:$4 sm:$0xff]  }
  0x26   :  { %3568 = vset.pattern.permute.xlu1 %v4063_v46 }
  0x27   :  { %3285 = vmatmul.mubr.msk.bf16.gmra.mrb[12].mxu0 %vm577_vm0, %v4208_v25  ;;  %3287 = vmatmul.mubr.msk.bf16.gmra.mrb[12].mxu1 %vm577_vm0, %v4208_v25 }
  0x28   :  { %2625 = vperm.xlu1 %3568, %v4290_v45   ;;  %801 = vmatpush1.bf16.msra.mxu0 %v3677_v43  ;;  %v3755_v43 = vld [vmem:[%s5368_s0 + $0x14] ss:$104 sps:$4 sm:$0xff]  }
  0x29   :  { %854 = vmatpush1.bf16.msra.mxu1 %v3680_v44  ;;  %828 = vmatprep.mubr.bf16.mxu0 %v4061_v1  ;;  %v4069_v44 = vmov 8  }
  0x2a   :  { %881 = vmatprep.mubr.bf16.mxu1 %v4061_v1  ;;  %902 = vmatprep.subr.bf16.mxu0 %v3685_v47  ;;  %v3753_v47 = vld [vmem:[%s5368_s0 + $0x10] ss:$104 sps:$4 sm:$0xff]  }
  0x2b   :  { %955 = vmatprep.subr.bf16.mxu1 %v3688_v48  ;;  %2578 = vperm.xlu0 %3564, %v4290_v45   ;;  %v3758_v48 = vld [vmem:[%s5368_s0 + $0xdc] ss:$104 sps:$4 sm:$0xff]  }
  0x2c   :  { %2633 = vperm.xlu1 %3568, %v4270_v40  }
  0x2f   :  { %3288 = vmatmul.mubr.msk.bf16.vlgmr.msra.gmra.mrb[16].mxu0 %vm577_vm0, %v4167_v14  ;;  %3290 = vmatmul.mubr.msk.bf16.vlgmr.msra.gmra.mrb[16].mxu1 %vm577_vm0, %v4167_v14 }
  0x30   :  { %903 = vmatpush1.bf16.msra.mxu0 %v3683_v49  ;;  %956 = vmatpush1.bf16.msra.mxu1 %v3686_v50  ;;  %v3761_v49 = vld [vmem:[%s5368_s0 + $0xe4] ss:$104 sps:$4 sm:$0xff]   ;;  %v3759_v50 = vld [vmem:[%s5368_s0 + $0xe0] ss:$104 sps:$4 sm:$0xff]  }
  0x31   :  { %2637 = vperm.xlu1 %3568, %v4218_v27   ;;  %904 = vmatprep.subr.bf16.mxu0 %v3691_v51  ;;  %v3756_v51 = vld [vmem:[%s5368_s0 + $0xd8] ss:$104 sps:$4 sm:$0xff]  }
  0x32   :  { %957 = vmatprep.subr.bf16.mxu1 %v3694_v52  ;;  %838 = vmatprep.mubr.bf16.mxu0 %v4061_v1  ;;  %v3764_v52 = vld [vmem:[%s5368_s0 + $0x1ac] ss:$104 sps:$4 sm:$0xff]  }
  0x33   :  { %891 = vmatprep.mubr.bf16.mxu1 %v4061_v1  ;;  %2588 = vperm.xlu0 %3564, %v4270_v40  }
  0x34   :  { %905 = vmatpush1.bf16.msra.mxu0 %v3689_v53  ;;  %958 = vmatpush1.bf16.msra.mxu1 %v3692_v54  ;;  %v4560_v53 = vld [vmem:[%s5372_s1 + $0x8] sm:$0xff]   ;;  %v3766_v54 = vld [vmem:[%s5368_s0 + $0x1b0] ss:$104 sps:$4 sm:$0xff]  }
  0x35   :  { %3571 = vset.pattern.permute.xlu1 %v4064_v59  ;;  %906 = vmatprep.subr.bf16.mxu0 %v3697_v55  ;;  %v3762_v55 = vld [vmem:[%s5368_s0 + $0x1a8] ss:$104 sps:$4 sm:$0xff]  }
  0x36   :  { %2653 = vperm.xlu1 %3571, %v4190_v21   ;;  %959 = vmatprep.subr.bf16.mxu1 %v3700_v56  ;;  %v3771_v56 = vld [vmem:[%s5368_s0 + $0x1c] ss:$104 sps:$4 sm:$0xff]  }
  0x37   :  { %3289 = vmatmul.mubr.msk.bf16.gmra.mrb[20].mxu0 %vm577_vm0, %v4208_v25  ;;  %3291 = vmatmul.mubr.msk.bf16.gmra.mrb[20].mxu1 %vm577_vm0, %v4208_v25 }
  0x38   :  { %907 = vmatpush1.bf16.msra.mxu0 %v3695_v57  ;;  %960 = vmatpush1.bf16.msra.mxu1 %v3698_v58  ;;  %v4070_v57 = vmov 9   ;;  %v3769_v58 = vld [vmem:[%s5368_s0 + $0x18] ss:$104 sps:$4 sm:$0xff]  }
  0x39   :  { %934 = vmatprep.mubr.bf16.mxu0 %v4061_v1  ;;  %987 = vmatprep.mubr.bf16.mxu1 %v4061_v1 }
  0x3a   :  { %2657 = vperm.xlu1 %3571, %v4270_v40   ;;  %1008 = vmatprep.subr.bf16.mxu0 %v3703_v60  ;;  %v3777_v60 = vld [vmem:[%s5368_s0 + $0xec] ss:$104 sps:$4 sm:$0xff]  }
  0x3b   :  { %1061 = vmatprep.subr.bf16.mxu1 %v3706_v61  ;;  %3566 = vset.pattern.permute.xlu0 %v4062_v35  ;;  %v4522_v35 = vld [vmem:[%s5372_s1] sm:$0xff]  }
  0x3c   :  { %2601 = vperm.xlu0 %3566, %v4290_v45   ;;  %v3772_v61 = vld [vmem:[%s5368_s0 + $0x20] ss:$104 sps:$4 sm:$0xff]  }
  0x3e   :  { %3572 = vset.pattern.permute.xlu1 %v4065_v2 }
  0x3f   :  { %3292 = vmatmul.mubr.msk.bf16.vlgmr.msra.gmra.mrb[24].mxu0 %vm577_vm0, %v4167_v14  ;;  %3294 = vmatmul.mubr.msk.bf16.vlgmr.msra.gmra.mrb[24].mxu1 %vm577_vm0, %v4167_v14 }
  0x40   :  { %1009 = vmatpush1.bf16.msra.mxu0 %v3701_v62  ;;  %1062 = vmatpush1.bf16.msra.mxu1 %v3704_v63  ;;  %v3775_v62 = vld [vmem:[%s5368_s0 + $0xe8] ss:$104 sps:$4 sm:$0xff]   ;;  %v3780_v63 = vld [vmem:[%s5368_s0 + $0x1bc] ss:$104 sps:$4 sm:$0xff]  }
  0x41   :  { %2673 = vperm.xlu1 %3572, %v4290_v45   ;;  %1010 = vmatprep.subr.bf16.mxu0 %v3709_v0  ;;  %v3781_v0 = vld [vmem:[%s5368_s0 + $0xf0] ss:$104 sps:$4 sm:$0xff]  }
  0x42   :  { %1063 = vmatprep.subr.bf16.mxu1 %v3712_v3  ;;  %944 = vmatprep.mubr.bf16.mxu0 %v4061_v1  ;;  %v3778_v3 = vld [vmem:[%s5368_s0 + $0x1b8] ss:$104 sps:$4 sm:$0xff]  }
  0x43   :  { %997 = vmatprep.mubr.bf16.mxu1 %v4061_v1  ;;  %2613 = vperm.xlu0 %3566, %v4218_v27  }
  0x44   :  { %1011 = vmatpush1.bf16.msra.mxu0 %v3707_v4  ;;  %1064 = vmatpush1.bf16.msra.mxu1 %v3710_v5  ;;  %v4071_v4 = vmov 10   ;;  %v3786_v5 = vld [vmem:[%s5368_s0 + $0x1c4] ss:$104 sps:$4 sm:$0xff]  }
  0x45   :  { %2681 = vperm.xlu1 %3572, %v4270_v40   ;;  %1012 = vmatprep.subr.bf16.mxu0 %v3715_v6  ;;  %v3789_v6 = vld [vmem:[%s5368_s0 + $0x2c] ss:$104 sps:$4 sm:$0xff]  }
  0x46   :  { %1065 = vmatprep.subr.bf16.mxu1 %v3718_v7  ;;  %v3784_v7 = vld [vmem:[%s5368_s0 + $0x1c0] ss:$104 sps:$4 sm:$0xff]  }
  0x47   :  { %3293 = vmatmul.mubr.msk.bf16.gmra.mrb[28].mxu0 %vm577_vm0, %v4208_v25  ;;  %3295 = vmatmul.mubr.msk.bf16.gmra.mrb[28].mxu1 %vm577_vm0, %v4208_v25 }
  0x48   :  { %1013 = vmatpush1.bf16.msra.mxu0 %v3713_v8  ;;  %1066 = vmatpush1.bf16.msra.mxu1 %v3716_v10  ;;  %v3792_v8 = vld [vmem:[%s5368_s0 + $0x34] ss:$104 sps:$4 sm:$0xff]  }
  0x49   :  { %2685 = vperm.xlu1 %3572, %v4218_v27   ;;  %1040 = vmatprep.mubr.bf16.mxu0 %v4061_v1 }
  0x4a   :  { %1093 = vmatprep.mubr.bf16.mxu1 %v4061_v1  ;;  %1114 = vmatprep.subr.bf16.mxu0 %v3721_v11  ;;  %v3795_v11 = vld [vmem:[%s5368_s0 + $0xfc] ss:$104 sps:$4 sm:$0xff]  }
  0x4b   :  { %1167 = vmatprep.subr.bf16.mxu1 %v3724_v12  ;;  %3569 = vset.pattern.permute.xlu0 %v4063_v46  ;;  %v3774_v46 = vld [vmem:[%s5368_s0 + $0x24] ss:$104 sps:$4 sm:$0xff]   ;;  %v3790_v12 = vld [vmem:[%s5368_s0 + $0x30] ss:$104 sps:$4 sm:$0xff]  }
  0x4c   :  { %2629 = vperm.xlu0 %3569, %v4190_v21  }
  0x4d   :  { %3575 = vset.pattern.permute.xlu1 %v4066_v17 }
  0x4e   :  { %2701 = vperm.xlu1 %3575, %v4190_v21  }
  0x4f   :  { %3296 = vmatmul.mubr.msk.bf16.vlgmr.msra.gmra.mrb[32].mxu0 %vm577_vm0, %v4167_v14  ;;  %3298 = vmatmul.mubr.msk.bf16.vlgmr.msra.gmra.mrb[32].mxu1 %vm577_vm0, %v4167_v14 }
  0x50   :  { %1115 = vmatpush1.bf16.msra.mxu0 %v3719_v15  ;;  %1168 = vmatpush1.bf16.msra.mxu1 %v3722_v16  ;;  %v3801_v15 = vld [vmem:[%s5368_s0 + $0x104] ss:$104 sps:$4 sm:$0xff]  }
  0x51   :  { %1116 = vmatprep.subr.bf16.mxu0 %v3727_v18  ;;  %1169 = vmatprep.subr.bf16.mxu1 %v3730_v19  ;;  %v3798_v16 = vld [vmem:[%s5368_s0 + $0x1cc] ss:$104 sps:$4 sm:$0xff]   ;;  %v4072_v18 = vmov 11  }
  0x52   :  { %2705 = vperm.xlu1 %3575, %v4270_v40   ;;  %1050 = vmatprep.mubr.bf16.mxu0 %v4061_v1 }
  0x53   :  { %1103 = vmatprep.mubr.bf16.mxu1 %v4061_v1  ;;  %3570 = vset.pattern.permute.xlu0 %v4064_v59  ;;  %v3783_v59 = vld [vmem:[%s5368_s0 + $0xf4] ss:$104 sps:$4 sm:$0xff]  }
  0x54   :  { %1117 = vmatpush1.bf16.msra.mxu0 %v3725_v20  ;;  %1170 = vmatpush1.bf16.msra.mxu1 %v3728_v22  ;;  %v3796_v20 = vld [vmem:[%s5368_s0 + $0x1c8] ss:$104 sps:$4 sm:$0xff]   ;;  %v3807_v22 = vld [vmem:[%s5368_s0 + $0x3c] ss:$104 sps:$4 sm:$0xff]  }
  0x55   :  { %1118 = vmatprep.subr.bf16.mxu0 %v3733_v23  ;;  %1171 = vmatprep.subr.bf16.mxu1 %v3736_v24  ;;  %v3802_v23 = vld [vmem:[%s5368_s0 + $0x1d0] ss:$104 sps:$4 sm:$0xff]   ;;  %v3810_v24 = vld [vmem:[%s5368_s0 + $0x44] ss:$104 sps:$4 sm:$0xff]  }
  0x56   :  { %3576 = vset.pattern.permute.xlu1 %v4067_v29  ;;  %2649 = vperm.xlu0 %3570, %v4290_v45  }
  0x57   :  { %2721 = vperm.xlu1 %3576, %v4290_v45   ;;  %3297 = vmatmul.mubr.msk.bf16.gmra.mrb[36].mxu0 %vm577_vm0, %v4208_v25 }
  0x58   :  { %3299 = vmatmul.mubr.msk.bf16.gmra.mrb[36].mxu1 %vm577_vm0, %v4208_v25  ;;  %1119 = vmatpush1.bf16.msra.mxu0 %v3731_v26 }
  0x59   :  { %1172 = vmatpush1.bf16.msra.mxu1 %v3734_v28  ;;  %1146 = vmatprep.mubr.bf16.mxu0 %v4061_v1  ;;  %v4073_v28 = vmov 12  }
  0x5a   :  { %1199 = vmatprep.mubr.bf16.mxu1 %v4061_v1  ;;  %3419 = vmatprep.subr.bf16.mxu1 %v3737_v30 }
  0x5b   :  { %2729 = vperm.xlu1 %3576, %v4270_v40   ;;  %1663 = vmatprep.subr.bf16.mxu0 %v3740_v31  ;;  %v3813_v31 = vld [vmem:[%s5368_s0 + $0x10c] ss:$104 sps:$4 sm:$0xff]  }
  0x5c   :  { %2661 = vperm.xlu0 %3570, %v4218_v27  }
  0x5f   :  { %2733 = vperm.xlu1 %3576, %v4218_v27   ;;  %3300 = vmatmul.mubr.msk.bf16.vlgmr.msra.gmra.mrb[40].mxu0 %vm577_vm0, %v4167_v14 }
  0x60   :  { %3302 = vmatmul.mubr.msk.bf16.vlgmr.msra.gmra.mrb[40].mxu1 %vm577_vm0, %v4167_v14  ;;  %1664 = vmatpush1.bf16.msra.mxu0 %v3738_v32 }
  0x61   :  { %3420 = vmatpush3.bf16.msra.mxu1 %v3737_v30  ;;  %1665 = vmatprep.subr.bf16.mxu0 %v3744_v33  ;;  %v3805_v30 = vld [vmem:[%s5368_s0 + $0x38] ss:$104 sps:$4 sm:$0xff]  }
  0x62   :  { %3421 = vmatprep.subr.bf16.mxu1 %v3741_v34  ;;  %1156 = vmatprep.mubr.bf16.mxu0 %v4061_v1  ;;  %v3808_v33 = vld [vmem:[%s5368_s0 + $0x40] ss:$104 sps:$4 sm:$0xff]  }
  0x63   :  { %3579 = vset.pattern.permute.xlu1 %v4068_v39  ;;  %1209 = vmatprep.mubr.bf16.mxu1 %v4061_v1 }
  0x64   :  { %2749 = vperm.xlu1 %3579, %v4190_v21   ;;  %1666 = vmatpush1.bf16.msra.mxu0 %v3742_v36  ;;  %v3816_v36 = vld [vmem:[%s5368_s0 + $0x1dc] ss:$104 sps:$4 sm:$0xff]  }
  0x65   :  { %3422 = vmatpush3.bf16.msra.mxu1 %v3741_v34  ;;  %1667 = vmatprep.subr.bf16.mxu0 %v3748_v37  ;;  %v3811_v34 = vld [vmem:[%s5368_s0 + $0x108] ss:$104 sps:$4 sm:$0xff]   ;;  %v3819_v37 = vld [vmem:[%s5368_s0 + $0x114] ss:$104 sps:$4 sm:$0xff]  }
  0x66   :  { %3423 = vmatprep.subr.bf16.mxu1 %v3745_v38  ;;  %3573 = vset.pattern.permute.xlu0 %v4065_v2  ;;  %v3793_v2 = vld [vmem:[%s5368_s0 + $0xf8] ss:$104 sps:$4 sm:$0xff]  }
  0x67   :  { %3301 = vmatmul.mubr.msk.bf16.gmra.mrb[44].mxu0 %vm577_vm0, %v4208_v25  ;;  %2677 = vperm.xlu0 %3573, %v4190_v21  }
  0x68   :  { %3303 = vmatmul.mubr.msk.bf16.gmra.mrb[44].mxu1 %vm577_vm0, %v4208_v25  ;;  %2753 = vperm.xlu1 %3579, %v4270_v40  }
  0x69   :  { %3424 = vmatpush3.bf16.msra.mxu1 %v3745_v38  ;;  %1668 = vmatpush1.bf16.msra.mxu0 %v3746_v41  ;;  %v3817_v38 = vld [vmem:[%s5368_s0 + $0x110] ss:$104 sps:$4 sm:$0xff]  }
  0x6a   :  { %3425 = vmatprep.mubr.msk.bf16.mxu1 %vm577_vm0, %v4167_v14  ;;  %1695 = vmatprep.mubr.bf16.mxu0 %v4061_v1  ;;  %v3749_v14 = vld [vmem:[%s5368_s0 + $0x8] ss:$104 sps:$4 sm:$0xff]   ;;  %v3814_v41 = vld [vmem:[%s5368_s0 + $0x1d8] ss:$104 sps:$4 sm:$0xff]  }
  0x6b   :  { %1716 = vmatprep.subr.bf16.mxu1 %v3751_v42  ;;  %1769 = vmatprep.subr.bf16.mxu0 %v3755_v43  ;;  %v4748_v43 = vld [vmem:[%s5371_s4 + $0x8] sm:$0xff] }
  0x6c   :  { %3580 = vset.pattern.permute.xlu1 %v4069_v44  ;;  %3574 = vset.pattern.permute.xlu0 %v4066_v17  ;;  %v3799_v17 = vld [vmem:[%s5368_s0 + $0x100] ss:$104 sps:$4 sm:$0xff]  }
  0x6d   :  { %2769 = vperm.xlu1 %3580, %v4290_v45   ;;  %2697 = vperm.xlu0 %3574, %v4290_v45  }
  0x6f   :  { %3383 = vmatmul.mubr.msk.bf16.vlgmr.msra.gmra.mrb[0].mxu0 %vm577_vm0, %v4522_v35 }
  0x70   :  { %3426 = vmatmul.mubr.msk.bf16.vlgmr.msra.gmra.mrb[48].mxu1 %vm577_vm0, %v4208_v25  ;;  %1770 = vmatpush1.bf16.msra.mxu0 %v3753_v47  ;;  %v3768_v25 = vld [vmem:[%s5368_s0 + $0x1b4] ss:$104 sps:$4 sm:$0xff]  }
  0x71   :  { %1717 = vmatpush1.bf16.msra.mxu1 %v3749_v14  ;;  %2777 = vperm.xlu1 %3580, %v4270_v40   ;;  %v3825_v47 = vld [vmem:[%s5368_s0 + $0x4c] ss:$104 sps:$4 sm:$0xff]   ;;  %v4074_v14 = vmov 13  }
  0x72   :  { %1718 = vmatprep.subr.bf16.mxu1 %v3758_v48  ;;  %1771 = vmatprep.subr.bf16.mxu0 %v3761_v49  ;;  %v3828_v48 = vld [vmem:[%s5368_s0 + $0x54] ss:$104 sps:$4 sm:$0xff]  }
  0x73   :  { %1705 = vmatprep.mubr.bf16.mxu0 %v4061_v1  ;;  %1748 = vmatprep.mubr.bf16.mxu1 %v4061_v1 }
  0x74   :  { %1772 = vmatpush1.bf16.msra.mxu0 %v3759_v50  ;;  %2709 = vperm.xlu0 %3574, %v4218_v27   ;;  %v3823_v50 = vld [vmem:[%s5368_s0 + $0x48] ss:$104 sps:$4 sm:$0xff]  }
  0x75   :  { %1719 = vmatpush1.bf16.msra.mxu1 %v3756_v51  ;;  %2781 = vperm.xlu1 %3580, %v4218_v27   ;;  %v3831_v51 = vld [vmem:[%s5368_s0 + $0x11c] ss:$104 sps:$4 sm:$0xff]  }
  0x76   :  { %1720 = vmatprep.subr.bf16.mxu1 %v3764_v52  ;;  %1773 = vmatprep.subr.bf16.mxu0 %v3768_v25  ;;  %v3826_v25 = vld [vmem:[%s5368_s0 + $0x50] ss:$104 sps:$4 sm:$0xff]  }
  0x77   :  { %3384 = vmatmul.mubr.msk.bf16.gmra.mrb[4].mxu0 %vm577_vm0, %v4560_v53 }
  0x78   :  { %1774 = vmatpush1.bf16.msra.mxu0 %v3766_v54  ;;  %1801 = vmatprep.mubr.bf16.mxu0 %v4061_v1  ;;  %v3829_v54 = vld [vmem:[%s5368_s0 + $0x118] ss:$104 sps:$4 sm:$0xff]  }
  0x79   :  { %1721 = vmatpush1.bf16.msra.mxu1 %v3762_v55  ;;  %3583 = vset.pattern.permute.xlu1 %v4070_v57  ;;  %v4075_v55 = vmov 14  }
  0x7a   :  { %2797 = vperm.xlu1 %3583, %v4190_v21   ;;  %1822 = vmatprep.subr.bf16.mxu1 %v3771_v56  ;;  %v3834_v56 = vld [vmem:[%s5368_s0 + $0x1ec] ss:$104 sps:$4 sm:$0xff]  }
  0x7b   :  { %1875 = vmatprep.subr.bf16.mxu0 %v3774_v46  ;;  %3577 = vset.pattern.permute.xlu0 %v4067_v29  ;;  %v3822_v29 = vld [vmem:[%s5368_s0 + $0x1e4] ss:$104 sps:$4 sm:$0xff]   ;;  %v3835_v46 = vld [vmem:[%s5368_s0 + $0x120] ss:$104 sps:$4 sm:$0xff]  }
  0x7c   :  { %3385 = vmatmul.mubr.msk.bf16.vlgmr.msra.gmra.mrb[0].mxu1 %vm577_vm0, %v4522_v35  ;;  %2725 = vperm.xlu0 %3577, %v4748_v43  }
  0x7d   :  { %1823 = vmatpush1.bf16.msra.mxu1 %v3769_v58  ;;  %1758 = vmatprep.mubr.bf16.mxu1 %v4061_v1 }
  0x7e   :  { %2801 = vperm.xlu1 %3583, %v4270_v40   ;;  %1824 = vmatprep.subr.bf16.mxu1 %v3777_v60  ;;  %v3832_v60 = vld [vmem:[%s5368_s0 + $0x1e8] ss:$104 sps:$4 sm:$0xff]  }
  0x7f   :  { %3387 = vmatmul.mubr.msk.bf16.vlgmr.msra.gmra.mrb[8].mxu0 %vm577_vm0, %v4522_v35 }
  0x80   :  { %1876 = vmatpush1.bf16.msra.mxu0 %v3772_v61  ;;  %1811 = vmatprep.mubr.bf16.mxu0 %v4061_v1  ;;  %v3843_v61 = vld [vmem:[%s5368_s0 + $0x5c] ss:$104 sps:$4 sm:$0xff]  }
  0x81   :  { %1825 = vmatpush1.bf16.msra.mxu1 %v3775_v62  ;;  %1877 = vmatprep.subr.bf16.mxu0 %v3783_v59  ;;  %v4818_v62 = vld [vmem:[%s5371_s4 + $0x18] sm:$0xff] }
  0x82   :  { %3584 = vset.pattern.permute.xlu1 %v4071_v4  ;;  %1826 = vmatprep.subr.bf16.mxu1 %v3780_v63  ;;  %v3838_v59 = vld [vmem:[%s5368_s0 + $0x1f0] ss:$104 sps:$4 sm:$0xff]  }
  0x83   :  { %2817 = vperm.xlu1 %3584, %v4290_v45   ;;  %3578 = vset.pattern.permute.xlu0 %v4068_v39  ;;  %v3837_v39 = vld [vmem:[%s5368_s0 + $0x124] ss:$104 sps:$4 sm:$0xff]  }
  0x84   :  { %3386 = vmatmul.mubr.msk.bf16.gmra.mrb[4].mxu1 %vm577_vm0, %v4560_v53  ;;  %1878 = vmatpush1.bf16.msra.mxu0 %v3781_v0  ;;  %v3844_v0 = vld [vmem:[%s5368_s0 + $0x60] ss:$104 sps:$4 sm:$0xff]  }
  0x85   :  { %1827 = vmatpush1.bf16.msra.mxu1 %v3778_v3  ;;  %1854 = vmatprep.mubr.bf16.mxu1 %v4061_v1  ;;  %v4641_v10 = vpop.permute.xlu1 %2364 }
  0x86   :  { %1879 = vmatprep.subr.bf16.mxu0 %v3786_v5  ;;  %1928 = vmatprep.subr.bf16.mxu1 %v3789_v6  ;;  %v3847_v5 = vld [vmem:[%s5368_s0 + $0x12c] ss:$104 sps:$4 sm:$0xff]   ;;  %v4076_v6 = vmov 15  }
  0x87   :  { %2825 = vperm.xlu1 %3584, %v4270_v40   ;;  %3388 = vmatmul.mubr.msk.bf16.gmra.mrb[12].mxu0 %vm577_vm0, %v4560_v53 }
  0x88   :  { %1880 = vmatpush1.bf16.msra.mxu0 %v3784_v7  ;;  %1907 = vmatprep.mubr.bf16.mxu0 %v4061_v1  ;;  %v3851_v7 = vld [vmem:[%s5368_s0 + $0x130] ss:$104 sps:$4 sm:$0xff]  }
  0x89   :  { %1981 = vmatprep.subr.bf16.mxu0 %v3792_v8  ;;  %v4654_v13 = vpop.permute.xlu1 %2369  ;;  %2745 = vperm.xlu0 %3578, %v4290_v45   ;;  %v3850_v8 = vld [vmem:[%s5368_s0 + $0x1fc] ss:$104 sps:$4 sm:$0xff]  }
  0x8b   :  { %2829 = vperm.xlu1 %3584, %v4218_v27  }
  0x8c   :  { %3389 = vmatmul.mubr.msk.bf16.vlgmr.msra.gmra.mrb[8].mxu1 %vm577_vm0, %v4522_v35 }
  0x8d   :  { %1929 = vmatpush1.bf16.msra.mxu1 %v3787_v9  ;;  %1864 = vmatprep.mubr.bf16.mxu1 %v4061_v1  ;;  %v4671_v19 = vpop.permute.xlu1 %2583  ;;  %v4867_v9 = vld [vmem:[%s5371_s4] sm:$0xff] }
  0x8e   :  { %1930 = vmatprep.subr.bf16.mxu1 %v3795_v11  ;;  %2757 = vperm.xlu0 %3578, %v4818_v62  }
  0x8f   :  { %3587 = vset.pattern.permute.xlu1 %v4072_v18  ;;  %3391 = vmatmul.mubr.msk.bf16.vlgmr.msra.gmra.mrb[16].mxu0 %vm577_vm0, %v4522_v35 }
  0x90   :  { %2845 = vperm.xlu1 %3587, %v4190_v21   ;;  %1982 = vmatpush1.bf16.msra.mxu0 %v3790_v12  ;;  %v3804_v21 = vld [vmem:[%s5368_s0 + $0x1d4] ss:$104 sps:$4 sm:$0xff]  }
  0x91   :  { %1931 = vmatpush1.bf16.msra.mxu1 %v3793_v2  ;;  %1983 = vmatprep.subr.bf16.mxu0 %v3801_v15  ;;  %v4875_v12 = vld [vmem:[%s5371_s4 + $0x10] sm:$0xff]  ;;  %v3852_v2 = vld [vmem:[%s5368_s0 + $0x200] ss:$104 sps:$4 sm:$0xff]  }
  0x92   :  { %1932 = vmatprep.subr.bf16.mxu1 %v3798_v16  ;;  %1917 = vmatprep.mubr.bf16.mxu0 %v4061_v1  ;;  %v4699_v26 = vpop.permute.xlu1 %2593  ;;  %v4077_v16 = vmov 16  }
  0x93   :  { %3581 = vset.pattern.permute.xlu0 %v4069_v44  ;;  %v3845_v44 = vld [vmem:[%s5368_s0 + $0x128] ss:$104 sps:$4 sm:$0xff]  }
  0x94   :  { %3390 = vmatmul.mubr.msk.bf16.gmra.mrb[12].mxu1 %vm577_vm0, %v4560_v53  ;;  %2849 = vperm.xlu1 %3587, %v4270_v40  }
  0x95   :  { %1933 = vmatpush1.bf16.msra.mxu1 %v3796_v20  ;;  %1984 = vmatpush1.bf16.msra.mxu0 %v3799_v17 }
  0x96   :  { %1960 = vmatprep.mubr.bf16.mxu1 %v4061_v1  ;;  %1985 = vmatprep.subr.bf16.mxu0 %v3804_v21  ;;  %v4078_v21 = vmov 17  }
  0x97   :  { %3392 = vmatmul.mubr.msk.bf16.gmra.mrb[20].mxu0 %vm577_vm0, %v4560_v53  ;;  %2034 = vmatprep.subr.bf16.mxu1 %v3807_v22 }
  0x98   :  { %3588 = vset.pattern.permute.xlu1 %v4073_v28  ;;  %2013 = vmatprep.mubr.bf16.mxu0 %v4061_v1 }
  0x99   :  { %2865 = vperm.xlu1 %3588, %v4290_v45   ;;  %1986 = vmatpush1.bf16.msra.mxu0 %v3802_v23  ;;  %v4080_v23 = vmov 19  }
  0x9a   :  { %2087 = vmatprep.subr.bf16.mxu0 %v3810_v24  ;;  %2773 = vperm.xlu0 %3581, %v4748_v43  }
  0x9b   :  { %v4711_v32 = vpop.permute.xlu1 %2605 }
  0x9c   :  { %3393 = vmatmul.mubr.msk.bf16.vlgmr.msra.gmra.mrb[16].mxu1 %vm577_vm0, %v4522_v35 }
  0x9d   :  { %2035 = vmatpush1.bf16.msra.mxu1 %v3805_v30  ;;  %2873 = vperm.xlu1 %3588, %v4270_v40  }
  0x9e   :  { %2036 = vmatprep.subr.bf16.mxu1 %v3813_v31  ;;  %1970 = vmatprep.mubr.bf16.mxu1 %v4061_v1 }
  0x9f   :  { %3395 = vmatmul.mubr.msk.bf16.vlgmr.msra.gmra.mrb[24].mxu0 %vm577_vm0, %v4522_v35  ;;  %3582 = vset.pattern.permute.xlu0 %v4070_v57  ;;  %v3848_v57 = vld [vmem:[%s5368_s0 + $0x1f8] ss:$104 sps:$4 sm:$0xff]  }
  0xa0   :  { %2088 = vmatpush1.bf16.msra.mxu0 %v3808_v33  ;;  %2023 = vmatprep.mubr.bf16.mxu0 %v4061_v1 }
  0xa1   :  { %2877 = vperm.xlu1 %3588, %v4218_v27   ;;  %2037 = vmatpush1.bf16.msra.mxu1 %v3811_v34  ;;  %v4740_v42 = vpop.permute.xlu1 %2609  ;;  %v3820_v27 = vld [vmem:[%s5368_s0 + $0x1e0] ss:$104 sps:$4 sm:$0xff]  }
  0xa2   :  { %2038 = vmatprep.subr.bf16.mxu1 %v3816_v36  ;;  %2089 = vmatprep.subr.bf16.mxu0 %v3819_v37  ;;  %v4081_v37 = vmov 20  }
  0xa3   :  { %2793 = vperm.xlu0 %3582, %v4867_v9  }
  0xa4   :  { %3394 = vmatmul.mubr.msk.bf16.gmra.mrb[20].mxu1 %vm577_vm0, %v4560_v53  ;;  %2090 = vmatpush1.bf16.msra.mxu0 %v3817_v38 }
  0xa5   :  { %3591 = vset.pattern.permute.xlu1 %v4074_v14  ;;  %2039 = vmatpush1.bf16.msra.mxu1 %v3814_v41 }
  0xa6   :  { %2893 = vperm.xlu1 %3591, %v4748_v43   ;;  %2066 = vmatprep.mubr.bf16.mxu1 %v4061_v1 }
  0xa7   :  { %3396 = vmatmul.mubr.msk.bf16.gmra.mrb[28].mxu0 %vm577_vm0, %v4560_v53  ;;  %v4767_v49 = vpop.permute.xlu1 %2625  ;;  %2091 = vmatprep.subr.bf16.mxu0 %v3822_v29 }
  0xa8   :  { %2140 = vmatprep.subr.bf16.mxu1 %v3825_v47  ;;  %2092 = vmatpush1.bf16.msra.mxu0 %v3820_v27  ;;  %v4082_v47 = vmov 21  }
  0xa9   :  { %2119 = vmatprep.mubr.bf16.mxu0 %v4061_v1  ;;  %2193 = vmatprep.subr.bf16.mxu0 %v3828_v48 }
  0xaa   :  { %2897 = vperm.xlu1 %3591, %v4270_v40   ;;  %2805 = vperm.xlu0 %3582, %v4818_v62  }
  0xab   :  { %v4778_v52 = vpop.permute.xlu1 %2633 }
  0xac   :  { %3397 = vmatmul.mubr.msk.bf16.vlgmr.msra.gmra.mrb[24].mxu1 %vm577_vm0, %v4522_v35 }
  0xad   :  { %2141 = vmatpush1.bf16.msra.mxu1 %v3823_v50  ;;  %2076 = vmatprep.mubr.bf16.mxu1 %v4061_v1 }
  0xae   :  { %3592 = vset.pattern.permute.xlu1 %v4075_v55  ;;  %2142 = vmatprep.subr.bf16.mxu1 %v3831_v51 }
  0xaf   :  { %2913 = vperm.xlu1 %3592, %v4290_v45   ;;  %3399 = vmatmul.mubr.msk.bf16.vlgmr.msra.gmra.mrb[32].mxu0 %vm577_vm0, %v4522_v35  ;;  %v3840_v45 = vld [vmem:[%s5368_s0 + $0x1f4] ss:$104 sps:$4 sm:$0xff]  }
  0xb0   :  { %2194 = vmatpush1.bf16.msra.mxu0 %v3826_v25  ;;  %2129 = vmatprep.mubr.bf16.mxu0 %v4061_v1  ;;  %v4804_v58 = vpop.permute.xlu1 %2637 }
  0xb1   :  { %2143 = vmatpush1.bf16.msra.mxu1 %v3829_v54  ;;  %2195 = vmatprep.subr.bf16.mxu0 %v3837_v39  ;;  %v4083_v54 = vmov 22  }
  0xb2   :  { %2144 = vmatprep.subr.bf16.mxu1 %v3834_v56  ;;  %3585 = vset.pattern.permute.xlu0 %v4071_v4 }
  0xb3   :  { %2921 = vperm.xlu1 %3592, %v4270_v40   ;;  %v3841_v40 = vld [vmem:[%s5368_s0 + $0x58] ss:$104 sps:$4 sm:$0xff]   ;;  %2821 = vperm.xlu0 %3585, %v4748_v43  }
  0xb4   :  { %3398 = vmatmul.mubr.msk.bf16.gmra.mrb[28].mxu1 %vm577_vm0, %v4560_v53  ;;  %2196 = vmatpush1.bf16.msra.mxu0 %v3835_v46 }
  0xb5   :  { %2145 = vmatpush1.bf16.msra.mxu1 %v3832_v60  ;;  %v4827_v63 = vpop.permute.xlu1 %2653  ;;  %2172 = vmatprep.mubr.bf16.mxu1 %v4061_v1 }
  0xb6   :  { %2197 = vmatprep.subr.bf16.mxu0 %v3840_v45  ;;  %2246 = vmatprep.subr.bf16.mxu1 %v3843_v61  ;;  %v4084_v45 = vmov 23  }
  0xb7   :  { %2925 = vperm.xlu1 %3592, %v4818_v62   ;;  %3400 = vmatmul.mubr.msk.bf16.gmra.mrb[36].mxu0 %vm577_vm0, %v4560_v53 }
  0xb8   :  { %2198 = vmatpush1.bf16.msra.mxu0 %v3838_v59  ;;  %2225 = vmatprep.mubr.bf16.mxu0 %v4061_v1 }
  0xb9   :  { %3429 = vmatprep.subr.bf16.mxu0 %v3844_v0  ;;  %v4841_v3 = vpop.permute.xlu1 %2657  ;;  %3586 = vset.pattern.permute.xlu0 %v4072_v18  ;;  %v4079_v18 = vmov 18  }
  0xba   :  { %2841 = vperm.xlu0 %3586, %v4867_v9  }
  0xbb   :  { %3595 = vset.pattern.permute.xlu1 %v4076_v6 }
  0xbc   :  { %3401 = vmatmul.mubr.msk.bf16.vlgmr.msra.gmra.mrb[32].mxu1 %vm577_vm0, %v4522_v35  ;;  %2941 = vperm.xlu1 %3595, %v4748_v43  }
  0xbd   :  { %2247 = vmatpush1.bf16.msra.mxu1 %v3841_v40  ;;  %2182 = vmatprep.mubr.bf16.mxu1 %v4061_v1 }
  0xbe   :  { %2248 = vmatprep.subr.bf16.mxu1 %v3847_v5  ;;  %2853 = vperm.xlu0 %3586, %v4818_v62  }
  0xbf   :  { %3403 = vmatmul.mubr.msk.bf16.vlgmr.msra.gmra.mrb[40].mxu0 %vm577_vm0, %v4522_v35 }
  0xc0   :  { %v4870_v11 = vpop.permute.xlu1 %2673  ;;  %3430 = vmatpush3.bf16.msra.mxu0 %v3844_v0  ;;  %2945 = vperm.xlu1 %3595, %v4875_v12  }
  0xc1   :  { %2249 = vmatpush1.bf16.msra.mxu1 %v3845_v44  ;;  %3431 = vmatprep.subr.bf16.mxu0 %v3851_v7  ;;  %v4085_v44 = vmov 24  }
  0xc2   :  { %2250 = vmatprep.subr.bf16.mxu1 %v3850_v8  ;;  %2235 = vmatprep.mubr.bf16.mxu0 %v4061_v1 }
  0xc3   :  { %3589 = vset.pattern.permute.xlu0 %v4073_v28  ;;  %v4939_v28 = vpop.permute.xlu0 %2354 }
  0xc4   :  { %3402 = vmatmul.mubr.msk.bf16.gmra.mrb[36].mxu1 %vm577_vm0, %v4560_v53  ;;  %v4888_v15 = vpop.permute.xlu1 %2681  ;;  %3596 = vset.pattern.permute.xlu1 %v4077_v16 }
  0xc5   :  { %2251 = vmatpush1.bf16.msra.mxu1 %v3848_v57  ;;  %3432 = vmatpush3.bf16.msra.mxu0 %v3851_v7 }
  0xc6   :  { %2961 = vperm.xlu1 %3596, %v4867_v9   ;;  %2278 = vmatprep.mubr.bf16.mxu1 %v4061_v1 }
  0xc7   :  { %3404 = vmatmul.mubr.msk.bf16.gmra.mrb[44].mxu0 %vm577_vm0, %v4560_v53  ;;  %3433 = vmatprep.subr.bf16.mxu0 %v3852_v2  ;;  %v4946_v31 = vpop.permute.xlu0 %2359 }
  0xc8   :  { %3435 = vmatprep.mubr.msk.bf16.mxu0 %vm577_vm0, %v4522_v35  ;;  %v4897_v20 = vpop.permute.xlu1 %2685  ;;  %2869 = vperm.xlu0 %3589, %v4748_v43  }
  0xc9   :  { %3434 = vmatpush3.bf16.msra.mxu0 %v3852_v2 }
  0xca   :  { %2969 = vperm.xlu1 %3596, %v4875_v12  }
  0xcb   :  { %v4954_v36 = vpop.permute.xlu0 %2578 }
  0xcc   :  { %3405 = vmatmul.mubr.msk.bf16.vlgmr.msra.gmra.mrb[40].mxu1 %vm577_vm0, %v4522_v35  ;;  %3590 = vset.pattern.permute.xlu0 %v4074_v14 }
  0xcd   :  { %v4903_v17 = vpop.permute.xlu1 %2701  ;;  %2288 = vmatprep.mubr.bf16.mxu1 %v4061_v1  ;;  %2889 = vperm.xlu0 %3590, %v4867_v9  }
  0xce   :  { %3598 = vset.pattern.permute.xlu1 %v4078_v21 }
  0xcf   :  { %3436 = vmatmul.mubr.msk.bf16.vlgmr.msra.gmra.mrb[48].mxu0 %vm577_vm0, %v4560_v53  ;;  %2985 = vperm.xlu1 %3598, %v4867_v9   ;;  %v4960_v41 = vpop.permute.xlu0 %2588 }
  0xd1   :  { %v4911_v4 = vpop.permute.xlu1 %2705  ;;  %2901 = vperm.xlu0 %3590, %v4818_v62  }
  0xd3   :  { %3600 = vset.pattern.permute.xlu1 %v4077_v16  ;;  %v4966_v27 = vpop.permute.xlu0 %2601 }
  0xd4   :  { %3406 = vmatmul.mubr.msk.bf16.gmra.mrb[44].mxu1 %vm577_vm0, %v4560_v53  ;;  %2973 = vperm.xlu1 %3600, %v4818_v62  }
  0xd5   :  { %3593 = vset.pattern.permute.xlu0 %v4075_v55 }
  0xd6   :  { %v4917_v1 = vpop.permute.xlu1 %2721  ;;  %2917 = vperm.xlu0 %3593, %v4748_v43  }
  0xd7   :  { %v4972_v48 = vpop.permute.xlu0 %2613 }
  0xd8   :  { %3601 = vset.pattern.permute.xlu1 %v4078_v21 }
  0xd9   :  { %2993 = vperm.xlu1 %3601, %v4875_v12  }
  0xda   :  { %v4922_v35 = vpop.permute.xlu1 %2729  ;;  %3594 = vset.pattern.permute.xlu0 %v4076_v6 }
  0xdb   :  { %2937 = vperm.xlu0 %3594, %v4867_v9   ;;  %v4978_v51 = vpop.permute.xlu0 %2629 }
  0xdd   :  { %3603 = vset.pattern.permute.xlu1 %v4079_v18 }
  0xde   :  { %3013 = vperm.xlu1 %3603, %v4748_v43   ;;  %v4927_v53 = vpop.permute.xlu1 %2733 }
  0xdf   :  { %2949 = vperm.xlu0 %3594, %v4818_v62   ;;  %v4987_v55 = vpop.permute.xlu0 %2649 }
  0xe2   :  { %3604 = vset.pattern.permute.xlu1 %v4078_v21 }
  0xe3   :  { %2997 = vperm.xlu1 %3604, %v4818_v62   ;;  %v4931_v22 = vpop.permute.xlu1 %2749  ;;  %3597 = vset.pattern.permute.xlu0 %v4077_v16  ;;  %v4994_v46 = vpop.permute.xlu0 %2661 }
  0xe4   :  { %2965 = vperm.xlu0 %3597, %v4748_v43  }
  0xe7   :  { %3605 = vset.pattern.permute.xlu1 %v4080_v23  ;;  %v4935_v24 = vpop.permute.xlu1 %2753  ;;  %v4999_v61 = vpop.permute.xlu0 %2677 }
  0xe8   :  { %3033 = vperm.xlu1 %3605, %v4867_v9   ;;  %3599 = vset.pattern.permute.xlu0 %v4078_v21 }
  0xe9   :  { %2989 = vperm.xlu0 %3599, %v4748_v43  }
  0xec   :  { %v4942_v30 = vpop.permute.xlu1 %2769  ;;  %3607 = vset.pattern.permute.xlu1 %v4079_v18  ;;  %v5006_v0 = vpop.permute.xlu0 %2697 }
  0xed   :  { %3021 = vperm.xlu1 %3607, %v4818_v62   ;;  %3602 = vset.pattern.permute.xlu0 %v4079_v18 }
  0xee   :  { %3009 = vperm.xlu0 %3602, %v4867_v9  }
  0xf0   :  { %v4948_v33 = vpop.permute.xlu1 %2777 }
  0xf1   :  { %3608 = vset.pattern.permute.xlu1 %v4080_v23 }
  0xf2   :  { %3041 = vperm.xlu1 %3608, %v4875_v12   ;;  %3017 = vperm.xlu0 %3602, %v4875_v12  }
  0xf3   :  { %v5014_v6 = vpop.permute.xlu0 %2709 }
  0xf4   :  { %v4952_v34 = vpop.permute.xlu1 %2781 }
  0xf6   :  { %3610 = vset.pattern.permute.xlu1 %v4081_v37  ;;  %3606 = vset.pattern.permute.xlu0 %v4080_v23 }
  0xf7   :  { %3061 = vperm.xlu1 %3610, %v4748_v43   ;;  %3037 = vperm.xlu0 %3606, %v4748_v43  }
  0xf9   :  { %v4958_v38 = vpop.permute.xlu1 %2797 }
  0xfb   :  { %3611 = vset.pattern.permute.xlu1 %v4080_v23  ;;  %3609 = vset.pattern.permute.xlu0 %v4081_v37  ;;  %v5020_v8 = vpop.permute.xlu0 %2725 }
  0xfc   :  { %3045 = vperm.xlu1 %3611, %v4818_v62   ;;  %3057 = vperm.xlu0 %3609, %v4867_v9  }
  0xfd   :  { %v4963_v29 = vpop.permute.xlu1 %2801 }
 0x100   :  { %3612 = vset.pattern.permute.xlu1 %v4082_v47  ;;  %3065 = vperm.xlu0 %3609, %v4875_v12  }
 0x101   :  { %3081 = vperm.xlu1 %3612, %v4867_v9  }
 0x102   :  { %v4970_v14 = vpop.permute.xlu1 %2817 }
 0x104   :  { %3613 = vset.pattern.permute.xlu0 %v4082_v47 }
 0x105   :  { %3614 = vset.pattern.permute.xlu1 %v4081_v37  ;;  %3085 = vperm.xlu0 %3613, %v4748_v43  }
 0x106   :  { %v4974_v50 = vpop.permute.xlu1 %2825  ;;  %3069 = vperm.xlu1 %3614, %v4818_v62  }
 0x107   :  { %5375 = vst [vmem:[#allocation3_spill] sm:$0xff] %v4974_v50 }
 0x108   :  { %v5026_v2 = vpop.permute.xlu0 %2745 }
 0x109   :  { %3616 = vset.pattern.permute.xlu0 %v4083_v54 }
 0x10a   :  { %3615 = vset.pattern.permute.xlu1 %v4082_v47  ;;  %v4980_v25 = vpop.permute.xlu1 %2829  ;;  %3105 = vperm.xlu0 %3616, %v4867_v9  }
 0x10b   :  { %5376 = vst [vmem:[#allocation4_spill] sm:$0xff] %v4980_v25  ;;  %3089 = vperm.xlu1 %3615, %v4875_v12  }
 0x10e   :  { %3113 = vperm.xlu0 %3616, %v4875_v12  }
 0x10f   :  { %3617 = vset.pattern.permute.xlu1 %v4083_v54  ;;  %v4984_v39 = vpop.permute.xlu1 %2845 }
 0x110   :  { %3109 = vperm.xlu1 %3617, %v4748_v43  }
 0x112   :  { %3620 = vset.pattern.permute.xlu0 %v4084_v45 }
 0x113   :  { %v4990_v56 = vpop.permute.xlu1 %2849  ;;  %3133 = vperm.xlu0 %3620, %v4748_v43  }
 0x114   :  { %5377 = vst [vmem:[#allocation5_spill] sm:$0xff] %v4990_v56  ;;  %3618 = vset.pattern.permute.xlu1 %v4082_v47 }
 0x115   :  { %3093 = vperm.xlu1 %3618, %v4818_v62  }
 0x117   :  { %3623 = vset.pattern.permute.xlu0 %v4085_v44 }
 0x118   :  { %v4996_v60 = vpop.permute.xlu1 %2865  ;;  %3153 = vperm.xlu0 %3623, %v4867_v9  }
 0x119   :  { %5378 = vst [vmem:[#allocation6_spill] sm:$0xff] %v4996_v60  ;;  %3619 = vset.pattern.permute.xlu1 %v4084_v45 }
 0x11a   :  { %3129 = vperm.xlu1 %3619, %v4867_v9   ;;  %v5031_v9 = vpop.permute.xlu0 %2757 }
 0x11c   :  { %v5002_v59 = vpop.permute.xlu1 %2873  ;;  %3161 = vperm.xlu0 %3623, %v4875_v12  }
 0x11d   :  { %5379 = vst [vmem:[#allocation7_spill] sm:$0xff] %v5002_v59 }
 0x11e   :  { %3621 = vset.pattern.permute.xlu1 %v4083_v54  ;;  %v5035_v21 = vpop.permute.xlu0 %2773 }
 0x11f   :  { %3117 = vperm.xlu1 %3621, %v4818_v62  }
 0x120   :  { %v5008_v40 = vpop.permute.xlu1 %2877 }
 0x121   :  { %5380 = vst [vmem:[#allocation8_spill] sm:$0xff] %v5008_v40 }
 0x123   :  { %3622 = vset.pattern.permute.xlu1 %v4084_v45 }
 0x124   :  { %3137 = vperm.xlu1 %3622, %v4875_v12   ;;  %v5039_v12 = vpop.permute.xlu0 %2793 }
 0x125   :  { %v5012_v5 = vpop.permute.xlu1 %2893 }
 0x126   :  { %5381 = vst [vmem:[#allocation9_spill] sm:$0xff] %v5012_v5 }
 0x128   :  { %3624 = vset.pattern.permute.xlu1 %v4085_v44 }
 0x129   :  { %3157 = vperm.xlu1 %3624, %v4748_v43   ;;  %v5018_v7 = vpop.permute.xlu1 %2897  ;;  %v5043_v47 = vpop.permute.xlu0 %2805 }
 0x12a   :  { %5382 = vst [vmem:[#allocation10_spill] sm:$0xff] %v5018_v7 }
 0x12d   :  { %3625 = vset.pattern.permute.xlu1 %v4084_v45 }
 0x12e   :  { %v5023_v57 = vpop.permute.xlu1 %2913  ;;  %3141 = vperm.xlu1 %3625, %v4818_v62  }
 0x12f   :  { %5383 = vst [vmem:[#allocation11_spill] sm:$0xff] %v5023_v57 }
 0x132   :  { %v5028_v16 = vpop.permute.xlu1 %2921  ;;  %3626 = vset.pattern.permute.xlu1 %v4085_v44 }
 0x133   :  { %5384 = vst [vmem:[#allocation12_spill] sm:$0xff] %v5028_v16  ;;  %3165 = vperm.xlu1 %3626, %v4818_v62  }
 0x136   :  { %v5033_v43 = vpop.permute.xlu1 %2925 }
 0x137   :  { %5385 = vst [vmem:[#allocation13_spill] sm:$0xff] %v5033_v43 }
 0x13b   :  { %v5037_v18 = vpop.permute.xlu1 %2941 }
 0x13c   :  { %5386 = vst [vmem:[#allocation14_spill] sm:$0xff] %v5037_v18 }
 0x13f   :  { %v5041_v23 = vpop.permute.xlu1 %2945 }
 0x140   :  { %5387 = vst [vmem:[#allocation15_spill] sm:$0xff] %v5041_v23 }
 0x142   :  { %v1697_v37 = vpop.f32.mrb[0].mxu0 }
 0x143   :  { %v5045_v54 = vpop.f32.mrb[48].mxu1  ;;  %v2372_v45 = vadd.f32 %v4939_v28, %v1697_v37  ;;  %v1699_v62 = vpop.f32.mrb[1].mxu0 }
 0x144   :  { %5388 = vst [vmem:[#allocation16_spill] sm:$0xff] %v5045_v54  ;;  %v5048_v44 = vpop.f32.mrb[49].mxu1  ;;  %v2373_v43 = vadd.f32 %v4939_v28, %v1699_v62  ;;  %v1701_v16 = vpop.f32.mrb[2].mxu0 }
 0x145   :  { %5389 = vst [vmem:[#allocation17_spill] sm:$0xff] %v5048_v44  ;;  %3853 = vtanh.f32 %v2372_v45  ;;  %v5051_v57 = vpop.f32.mrb[50].mxu1  ;;  %v2397_v18 = vadd.f32 %v4946_v31, %v1701_v16  ;;  %v1703_v40 = vpop.f32.mrb[3].mxu0 }
 0x146   :  { %5390 = vst [vmem:[#allocation18_spill] sm:$0xff] %v5051_v57  ;;  %3855 = vtanh.f32 %v2373_v43  ;;  %v5054_v23 = vpop.f32.mrb[51].mxu1  ;;  %v2398_v7 = vadd.f32 %v4946_v31, %v1703_v40  ;;  %v5057_v54 = vpop.permute.xlu1 %2961 }
 0x147   :  { %5391 = vst [vmem:[#allocation19_spill] sm:$0xff] %v5054_v23  ;;  %5392 = vst [vmem:[#allocation20_spill] sm:$0xff] %v5057_v54  ;;  %3857 = vtanh.f32 %v2397_v18  ;;  %v5059_v37 = vpop.permute.xlu0 %2821 }
 0x148   :  { %3859 = vtanh.f32 %v2398_v7 }
 0x14a   :  { %v1707_v44 = vpop.f32.mrb[4].mxu0  ;;  %v5061_v62 = vpop.permute.xlu1 %2969 }
 0x14b   :  { %5393 = vst [vmem:[#allocation21_spill] sm:$0xff] %v5061_v62  ;;  %v2422_v45 = vadd.f32 %v4641_v10, %v1707_v44  ;;  %v1709_v57 = vpop.f32.mrb[5].mxu0  ;;  %v5066_v40 = vpop.permute.xlu0 %2841 }
 0x14c   :  { %v2423_v16 = vadd.f32 %v4641_v10, %v1709_v57  ;;  %v1711_v59 = vpop.f32.mrb[6].mxu0 }
 0x14d   :  { %3861 = vtanh.f32 %v2422_v45  ;;  %v2447_v43 = vadd.f32 %v4654_v13, %v1711_v59  ;;  %v1713_v23 = vpop.f32.mrb[7].mxu0 }
 0x14e   :  { %3863 = vtanh.f32 %v2423_v16  ;;  %v2448_v7 = vadd.f32 %v4654_v13, %v1713_v23  ;;  %v5069_v18 = vpop.permute.xlu1 %2985 }
 0x14f   :  { %5394 = vst [vmem:[#allocation22_spill] sm:$0xff] %v5069_v18  ;;  %v3854_v54 = vpop.eup %3853  ;;  %3865 = vtanh.f32 %v2447_v43  ;;  %v1750_v62 = vpop.f32.mrb[0].mxu1 }
 0x150   :  { %v3856_v25 = vpop.eup %3855  ;;  %v2596_v44 = vmul.f32 %v3854_v54, %v4954_v36  ;;  %3867 = vtanh.f32 %v2448_v7  ;;  %v2374_v57 = vadd.f32 %v4939_v28, %v1750_v62  ;;  %v1752_v45 = vpop.f32.mrb[1].mxu1 }
 0x151   :  { %v3858_v56 = vpop.eup %3857  ;;  %v2616_v59 = vmul.f32 %v3856_v25, %v4966_v27  ;;  %v2375_v5 = vadd.f32 %v4939_v28, %v1752_v45  ;;  %v1754_v16 = vpop.f32.mrb[2].mxu1 }
 0x152   :  { %v5075_v50 = vpop.permute.xlu0 %2853  ;;  %v3860_v23 = vpop.eup %3859  ;;  %v2597_v18 = vmul.f32 %v3858_v56, %v4671_v19  ;;  %3869 = vtanh.f32 %v2374_v57  ;;  %v2399_v43 = vadd.f32 %v4946_v31, %v1754_v16 }
 0x153   :  { %5395 = vst [vmem:[#allocation23_spill] sm:$0xff] %v5075_v50  ;;  %v1756_v60 = vpop.f32.mrb[3].mxu1  ;;  %v1803_v36 = vpop.f32.mrb[8].mxu0  ;;  %v2620_v54 = vadd.f32 %v2616_v59, %v2596_v44  ;;  %v2617_v62 = vmul.f32 %v3860_v23, %v4711_v32  ;;  %3871 = vtanh.f32 %v2375_v5 }
 0x154   :  { %v2400_v7 = vadd.f32 %v4946_v31, %v1756_v60  ;;  %v1805_v27 = vpop.f32.mrb[9].mxu0  ;;  %v5081_v25 = vpop.permute.xlu1 %2973  ;;  %3873 = vtanh.f32 %v2399_v43  ;;  %v2376_v45 = vadd.f32 %v4939_v28, %v1803_v36 }
 0x155   :  { %5396 = vst [vmem:[#allocation24_spill] sm:$0xff] %v5081_v25  ;;  %v2377_v50 = vadd.f32 %v4939_v28, %v1805_v27  ;;  %v1807_v19 = vpop.f32.mrb[10].mxu0  ;;  %v2621_v56 = vadd.f32 %v2617_v62, %v2597_v18 }
 0x156   :  { %3875 = vtanh.f32 %v2400_v7  ;;  %v2401_v57 = vadd.f32 %v4946_v31, %v1807_v19  ;;  %v1809_v16 = vpop.f32.mrb[11].mxu0  ;;  %v5087_v5 = vpop.permute.xlu0 %2869 }
 0x157   :  { %3877 = vtanh.f32 %v2376_v45  ;;  %v2402_v32 = vadd.f32 %v4946_v31, %v1809_v16  ;;  %v3862_v60 = vpop.eup %3861  ;;  %v1760_v44 = vpop.f32.mrb[4].mxu1 }
 0x158   :  { %3879 = vtanh.f32 %v2377_v50  ;;  %v3864_v59 = vpop.eup %3863  ;;  %v2598_v23 = vmul.f32 %v3862_v60, %v4960_v41  ;;  %v2424_v43 = vadd.f32 %v4641_v10, %v1760_v44  ;;  %v1762_v36 = vpop.f32.mrb[5].mxu1 }
 0x159   :  { %3881 = vtanh.f32 %v2401_v57  ;;  %v5091_v18 = vpop.permute.xlu1 %2993  ;;  %v3866_v62 = vpop.eup %3865  ;;  %v2618_v7 = vmul.f32 %v3864_v59, %v4740_v42  ;;  %v2425_v27 = vadd.f32 %v4641_v10, %v1762_v36 }
 0x15a   :  { %5397 = vst [vmem:[#allocation25_spill] sm:$0xff] %v5091_v18  ;;  %3883 = vtanh.f32 %v2402_v32  ;;  %v1764_v45 = vpop.f32.mrb[6].mxu1  ;;  %v3868_v19 = vpop.eup %3867  ;;  %v2599_v50 = vmul.f32 %v3866_v62, %v4699_v26 }
 0x15b   :  { %3885 = vtanh.f32 %v2424_v43  ;;  %v2449_v16 = vadd.f32 %v4654_v13, %v1764_v45  ;;  %v1766_v41 = vpop.f32.mrb[7].mxu1  ;;  %v1813_v57 = vpop.f32.mrb[12].mxu0  ;;  %v5097_v60 = vadd.f32 %v2618_v7, %v2598_v23  ;;  %v2619_v44 = vmul.f32 %v3868_v19, %v4972_v48 }
 0x15c   :  { %3887 = vtanh.f32 %v2425_v27  ;;  %v2450_v25 = vadd.f32 %v4654_v13, %v1766_v41  ;;  %v1815_v42 = vpop.f32.mrb[13].mxu0  ;;  %v5101_v32 = vpop.permute.xlu0 %2889  ;;  %v2426_v36 = vadd.f32 %v4641_v10, %v1813_v57 }
 0x15d   :  { %v3870_v59 = vpop.eup %3869  ;;  %3889 = vtanh.f32 %v2449_v16  ;;  %v2427_v26 = vadd.f32 %v4641_v10, %v1815_v42  ;;  %v1817_v43 = vpop.f32.mrb[14].mxu0  ;;  %v5105_v45 = vadd.f32 %v2619_v44, %v2599_v50 }
 0x15e   :  { %v3872_v62 = vpop.eup %3871  ;;  %v2640_v23 = vmul.f32 %v3870_v59, %v4767_v49  ;;  %3891 = vtanh.f32 %v2450_v25  ;;  %v2451_v48 = vadd.f32 %v4654_v13, %v1817_v43  ;;  %v1819_v7 = vpop.f32.mrb[15].mxu0 }
 0x15f   :  { %v5109_v27 = vpop.permute.xlu1 %3013  ;;  %v3874_v19 = vpop.eup %3873  ;;  %v2664_v41 = vmul.f32 %v3872_v62, %v4987_v55  ;;  %3893 = vtanh.f32 %v2426_v36  ;;  %v2452_v16 = vadd.f32 %v4654_v13, %v1819_v7 }
 0x160   :  { %5398 = vst [vmem:[#allocation26_spill] sm:$0xff] %v5109_v27  ;;  %v3876_v57 = vpop.eup %3875  ;;  %v2644_v42 = vadd.f32 %v2640_v23, %v2620_v54  ;;  %v2641_v18 = vmul.f32 %v3874_v19, %v4978_v51  ;;  %3895 = vtanh.f32 %v2427_v26  ;;  %v1856_v50 = vpop.f32.mrb[8].mxu1 }
 0x161   :  { %v3878_v44 = vpop.eup %3877  ;;  %v2665_v49 = vmul.f32 %v3876_v57, %v4827_v63  ;;  %3897 = vtanh.f32 %v2451_v48  ;;  %v2378_v25 = vadd.f32 %v4939_v28, %v1856_v50  ;;  %v1858_v59 = vpop.f32.mrb[9].mxu1 }
 0x162   :  { %v5116_v43 = vpop.permute.xlu0 %2901  ;;  %v3880_v27 = vpop.eup %3879  ;;  %v2668_v55 = vadd.f32 %v2664_v41, %v2644_v42  ;;  %v2645_v36 = vadd.f32 %v2641_v18, %v2621_v56  ;;  %v2688_v62 = vmul.f32 %v3878_v44, %v4870_v11  ;;  %3899 = vtanh.f32 %v2452_v16 }
 0x163   :  { %v1860_v54 = vpop.f32.mrb[10].mxu1  ;;  %v3882_v23 = vpop.eup %3881  ;;  %v2712_v51 = vmul.f32 %v3880_v27, %v5006_v0  ;;  %3901 = vtanh.f32 %v2378_v25  ;;  %v2379_v26 = vadd.f32 %v4939_v28, %v1858_v59 }
 0x164   :  { %v2403_v63 = vadd.f32 %v4946_v31, %v1860_v54  ;;  %v1862_v48 = vpop.f32.mrb[11].mxu1  ;;  %v1909_v7 = vpop.f32.mrb[16].mxu0  ;;  %v2669_v57 = vadd.f32 %v2665_v49, %v2645_v36  ;;  %v2692_v50 = vadd.f32 %v2688_v62, %v2668_v55  ;;  %v2689_v41 = vmul.f32 %v3882_v23, %v4999_v61 }
 0x165   :  { %v3884_v19 = vpop.eup %3883  ;;  %v2404_v56 = vadd.f32 %v4946_v31, %v1862_v48  ;;  %v1911_v11 = vpop.f32.mrb[17].mxu0  ;;  %3903 = vtanh.f32 %v2379_v26  ;;  %v2380_v27 = vadd.f32 %v4939_v28, %v1909_v7 }
 0x166   :  { %v5124_v18 = vpop.permute.xlu1 %2997  ;;  %v3886_v16 = vpop.eup %3885  ;;  %v2713_v0 = vmul.f32 %v3884_v19, %v4903_v17  ;;  %v2381_v42 = vadd.f32 %v4939_v28, %v1911_v11  ;;  %v2716_v59 = vadd.f32 %v2712_v51, %v2692_v50  ;;  %v2693_v55 = vadd.f32 %v2689_v41, %v2669_v57 }
 0x167   :  { %v1913_v44 = vpop.f32.mrb[18].mxu0  ;;  %v5129_v25 = vpop.permute.xlu0 %2917  ;;  %v2642_v61 = vmul.f32 %v3886_v16, %v4778_v52  ;;  %3905 = vtanh.f32 %v2403_v63 }
 0x168   :  { %v3888_v49 = vpop.eup %3887  ;;  %v1915_v36 = vpop.f32.mrb[19].mxu0  ;;  %3907 = vtanh.f32 %v2404_v56  ;;  %v2405_v17 = vadd.f32 %v4946_v31, %v1913_v44  ;;  %v5136_v7 = vadd.f32 %v2713_v0, %v2693_v55 }
 0x169   :  { %v3890_v62 = vpop.eup %3889  ;;  %v2666_v54 = vmul.f32 %v3888_v49, %v4841_v3  ;;  %v2406_v23 = vadd.f32 %v4946_v31, %v1915_v36  ;;  %v2646_v48 = vadd.f32 %v2642_v61, %v5097_v60  ;;  %3909 = vtanh.f32 %v2380_v27  ;;  %v1866_v19 = vpop.f32.mrb[12].mxu1 }
 0x16a   :  { %v3892_v26 = vpop.eup %3891  ;;  %v2643_v51 = vmul.f32 %v3890_v62, %v4804_v58  ;;  %v5139_v52 = vpop.permute.xlu1 %3033  ;;  %3911 = vtanh.f32 %v2381_v42  ;;  %v2428_v3 = vadd.f32 %v4641_v10, %v1866_v19 }
 0x16b   :  { %v3894_v63 = vpop.eup %3893  ;;  %v2667_v57 = vmul.f32 %v3892_v26, %v4994_v46  ;;  %v1868_v50 = vpop.f32.mrb[13].mxu1  ;;  %v2670_v56 = vadd.f32 %v2666_v54, %v2646_v48  ;;  %3913 = vtanh.f32 %v2405_v17 }
 0x16c   :  { %v3896_v41 = vpop.eup %3895  ;;  %v2647_v11 = vadd.f32 %v2643_v51, %v5105_v45  ;;  %v2690_v60 = vmul.f32 %v3894_v63, %v4888_v15  ;;  %v1870_v16 = vpop.f32.mrb[14].mxu1  ;;  %3915 = vtanh.f32 %v2428_v3  ;;  %v2429_v46 = vadd.f32 %v4641_v10, %v1868_v50 }
 0x16d   :  { %v5145_v58 = vpop.permute.xlu0 %2937  ;;  %v3898_v0 = vpop.eup %3897  ;;  %v2714_v27 = vmul.f32 %v3896_v41, %v4911_v4  ;;  %v2453_v42 = vadd.f32 %v4654_v13, %v1870_v16  ;;  %3917 = vtanh.f32 %v2406_v23 }
 0x16e   :  { %v1872_v44 = vpop.f32.mrb[15].mxu1  ;;  %v1919_v49 = vpop.f32.mrb[20].mxu0  ;;  %v2671_v61 = vadd.f32 %v2667_v57, %v2647_v11  ;;  %v2694_v36 = vadd.f32 %v2690_v60, %v2670_v56  ;;  %v2691_v45 = vmul.f32 %v3898_v0, %v4897_v20  ;;  %3919 = vtanh.f32 %v2429_v46 }
 0x16f   :  { %v3900_v55 = vpop.eup %3899  ;;  %v1921_v15 = vpop.f32.mrb[21].mxu0  ;;  %v2454_v4 = vadd.f32 %v4654_v13, %v1872_v44  ;;  %v2430_v17 = vadd.f32 %v4641_v10, %v1919_v49  ;;  %3921 = vtanh.f32 %v2453_v42 }
 0x170   :  { %v3902_v62 = vpop.eup %3901  ;;  %v2715_v54 = vmul.f32 %v3900_v55, %v5014_v6  ;;  %v1923_v26 = vpop.f32.mrb[22].mxu0  ;;  %v2718_v51 = vadd.f32 %v2714_v27, %v2694_v36  ;;  %v2695_v19 = vadd.f32 %v2691_v45, %v2671_v61  ;;  %v2431_v23 = vadd.f32 %v4641_v10, %v1921_v15 }
 0x171   :  { %v5154_v48 = vpop.permute.xlu1 %3021  ;;  %v2736_v63 = vmul.f32 %v3902_v62, %v4917_v1  ;;  %v1925_v57 = vpop.f32.mrb[23].mxu0  ;;  %3923 = vtanh.f32 %v2454_v4  ;;  %v2455_v6 = vadd.f32 %v4654_v13, %v1923_v26 }
 0x172   :  { %v3904_v20 = vpop.eup %3903  ;;  %v2456_v3 = vadd.f32 %v4654_v13, %v1925_v57  ;;  %v5160_v41 = vadd.f32 %v2715_v54, %v2695_v19  ;;  %3925 = vtanh.f32 %v2430_v17  ;;  %v1962_v60 = vpop.f32.mrb[16].mxu1 }
 0x173   :  { %v3906_v50 = vpop.eup %3905  ;;  %v2740_v56 = vadd.f32 %v2736_v63, %v2716_v59  ;;  %v2760_v11 = vmul.f32 %v3904_v20, %v5026_v2  ;;  %v5163_v16 = vpop.permute.xlu0 %2949  ;;  %3927 = vtanh.f32 %v2431_v23  ;;  %v2382_v27 = vadd.f32 %v4939_v28, %v1962_v60 }
 0x174   :  { %v3908_v1 = vpop.eup %3907  ;;  %v2737_v0 = vmul.f32 %v3906_v50, %v5020_v8  ;;  %v1964_v46 = vpop.f32.mrb[17].mxu1  ;;  %3929 = vtanh.f32 %v2455_v6 }
 0x175   :  { %v3910_v42 = vpop.eup %3909  ;;  %v2764_v44 = vadd.f32 %v2760_v11, %v2740_v56  ;;  %v2761_v49 = vmul.f32 %v3908_v1, %v4931_v22  ;;  %v2383_v59 = vadd.f32 %v4939_v28, %v1964_v46  ;;  %v1966_v55 = vpop.f32.mrb[18].mxu1  ;;  %3931 = vtanh.f32 %v2456_v3 }
 0x176   :  { %v5169_v2 = vpop.permute.xlu1 %3041  ;;  %v3912_v61 = vpop.eup %3911  ;;  %v2741_v36 = vadd.f32 %v2737_v0, %v5136_v7  ;;  %v2784_v45 = vmul.f32 %v3910_v42, %v4942_v30  ;;  %v2407_v8 = vadd.f32 %v4946_v31, %v1966_v55  ;;  %3933 = vtanh.f32 %v2382_v27 }
 0x177   :  { %v1968_v15 = vpop.f32.mrb[19].mxu1  ;;  %v2015_v62 = vpop.f32.mrb[24].mxu0  ;;  %v2808_v4 = vmul.f32 %v3912_v61, %v5039_v12  ;;  %3935 = vtanh.f32 %v2383_v59 }
 0x178   :  { %v3914_v54 = vpop.eup %3913  ;;  %v2408_v22 = vadd.f32 %v4946_v31, %v1968_v15  ;;  %v2384_v17 = vadd.f32 %v4939_v28, %v2015_v62  ;;  %v2017_v26 = vpop.f32.mrb[25].mxu0  ;;  %v2765_v7 = vadd.f32 %v2761_v49, %v2741_v36  ;;  %v2788_v57 = vadd.f32 %v2784_v45, %v2764_v44 }
 0x179   :  { %v5177_v19 = vpop.permute.xlu0 %2965  ;;  %v3916_v63 = vpop.eup %3915  ;;  %v2785_v30 = vmul.f32 %v3914_v54, %v5035_v21  ;;  %3937 = vtanh.f32 %v2407_v8  ;;  %v2385_v12 = vadd.f32 %v4939_v28, %v2017_v26 }
 0x17a   :  { %v2019_v20 = vpop.f32.mrb[26].mxu0  ;;  %v3918_v23 = vpop.eup %3917  ;;  %v2738_v6 = vmul.f32 %v3916_v63, %v4922_v35  ;;  %v5183_v11 = vadd.f32 %v2808_v4, %v2788_v57  ;;  %3939 = vtanh.f32 %v2408_v22 }
 0x17b   :  { %v2409_v3 = vadd.f32 %v4946_v31, %v2019_v20  ;;  %v2021_v50 = vpop.f32.mrb[27].mxu0  ;;  %v3920_v56 = vpop.eup %3919  ;;  %v2789_v60 = vadd.f32 %v2785_v30, %v2765_v7  ;;  %v2809_v1 = vmul.f32 %v3918_v23, %v4958_v38  ;;  %3941 = vtanh.f32 %v2384_v17 }
 0x17c   :  { %v5186_v0 = vpop.permute.xlu1 %3061  ;;  %v3922_v21 = vpop.eup %3921  ;;  %v2742_v27 = vadd.f32 %v2738_v6, %v2718_v51  ;;  %v2762_v46 = vmul.f32 %v3920_v56, %v4935_v24  ;;  %v2410_v42 = vadd.f32 %v4946_v31, %v2021_v50  ;;  %3943 = vtanh.f32 %v2385_v12 }
 0x17d   :  { %v1972_v35 = vpop.f32.mrb[20].mxu1  ;;  %v3924_v44 = vpop.eup %3923  ;;  %v5190_v49 = vadd.f32 %v2809_v1, %v2789_v60  ;;  %v2739_v59 = vmul.f32 %v3922_v21, %v4927_v53  ;;  %3945 = vtanh.f32 %v2409_v3 }
 0x17e   :  { %v2432_v55 = vadd.f32 %v4641_v10, %v1972_v35  ;;  %v1974_v38 = vpop.f32.mrb[21].mxu1  ;;  %v5194_v61 = vpop.permute.xlu0 %2989  ;;  %v2766_v45 = vadd.f32 %v2762_v46, %v2742_v27  ;;  %v2763_v51 = vmul.f32 %v3924_v44, %v5031_v9 }
 0x17f   :  { %v3926_v36 = vpop.eup %3925  ;;  %v2433_v24 = vadd.f32 %v4641_v10, %v1974_v38  ;;  %v1976_v8 = vpop.f32.mrb[22].mxu1  ;;  %v2743_v62 = vadd.f32 %v2739_v59, %v5160_v41 }
 0x180   :  { %v3928_v15 = vpop.eup %3927  ;;  %v2786_v54 = vmul.f32 %v3926_v36, %v4948_v33  ;;  %3947 = vtanh.f32 %v2432_v55  ;;  %v2457_v53 = vadd.f32 %v4654_v13, %v1976_v8  ;;  %v1978_v4 = vpop.f32.mrb[23].mxu1 }
 0x181   :  { %v2025_v22 = vpop.f32.mrb[28].mxu0  ;;  %v3930_v17 = vpop.eup %3929  ;;  %v2810_v26 = vmul.f32 %v3928_v15, %v4963_v29  ;;  %3949 = vtanh.f32 %v2410_v42  ;;  %v2458_v9 = vadd.f32 %v4654_v13, %v1978_v4  ;;  %v2767_v41 = vadd.f32 %v2763_v51, %v2743_v62 }
 0x182   :  { %v2434_v63 = vadd.f32 %v4641_v10, %v2025_v22  ;;  %v2027_v7 = vpop.f32.mrb[29].mxu0  ;;  %v5204_v57 = vpop.permute.xlu1 %3045  ;;  %v2790_v20 = vadd.f32 %v2786_v54, %v2766_v45  ;;  %v2787_v33 = vmul.f32 %v3930_v17, %v4952_v34  ;;  %3951 = vtanh.f32 %v2433_v24 }
 0x183   :  { %v3932_v30 = vpop.eup %3931  ;;  %v2029_v23 = vpop.f32.mrb[30].mxu0  ;;  %3953 = vtanh.f32 %v2457_v53  ;;  %v2435_v29 = vadd.f32 %v4641_v10, %v2027_v7 }
 0x184   :  { %v3934_v6 = vpop.eup %3933  ;;  %v2811_v12 = vmul.f32 %v3932_v30, %v5043_v47  ;;  %v2459_v3 = vadd.f32 %v4654_v13, %v2029_v23  ;;  %v2031_v50 = vpop.f32.mrb[31].mxu0  ;;  %v2814_v60 = vadd.f32 %v2810_v26, %v2790_v20  ;;  %v2791_v1 = vadd.f32 %v2787_v33, %v2767_v41  ;;  %v5400_v33 = vld [vmem:[#allocation3_spill] sm:$0xff] }
 0x185   :  { %v3936_v56 = vpop.eup %3935  ;;  %v2832_v21 = vmul.f32 %v3934_v6, %v4970_v14  ;;  %3955 = vtanh.f32 %v2458_v9  ;;  %v5211_v27 = vpop.permute.xlu0 %3009  ;;  %v2460_v47 = vadd.f32 %v4654_v13, %v2031_v50 }
 0x186   :  { %v3938_v34 = vpop.eup %3937  ;;  %v2856_v46 = vmul.f32 %v3936_v56, %v5066_v40  ;;  %3957 = vtanh.f32 %v2434_v63  ;;  %v2068_v35 = vpop.f32.mrb[24].mxu1  ;;  %v5215_v44 = vadd.f32 %v2811_v12, %v2791_v1 }
 0x187   :  { %v3940_v42 = vpop.eup %3939  ;;  %v2836_v59 = vadd.f32 %v2832_v21, %v5183_v11  ;;  %v2833_v55 = vmul.f32 %v3938_v34, %v5059_v37  ;;  %3959 = vtanh.f32 %v2435_v29  ;;  %v2070_v38 = vpop.f32.mrb[25].mxu1  ;;  %v2386_v40 = vadd.f32 %v4939_v28, %v2068_v35  ;;  %v5399_v11 = vld [vmem:[#allocation6_spill] sm:$0xff] }
 0x188   :  { %v5219_v14 = vpop.permute.xlu1 %3081  ;;  %v3942_v36 = vpop.eup %3941  ;;  %v2857_v45 = vmul.f32 %v3940_v42, %v4984_v39  ;;  %3961 = vtanh.f32 %v2459_v3  ;;  %v2387_v51 = vadd.f32 %v4939_v28, %v2070_v38  ;;  %v5403_v38 = vld [vmem:[#allocation4_spill] sm:$0xff] }
 0x189   :  { %v2072_v24 = vpop.f32.mrb[26].mxu1  ;;  %v3944_v8 = vpop.eup %3943  ;;  %v2860_v15 = vadd.f32 %v2856_v46, %v2836_v59  ;;  %v2837_v62 = vadd.f32 %v2833_v55, %v5190_v49  ;;  %v2880_v54 = vmul.f32 %v3942_v36, %v5399_v11  ;;  %3963 = vtanh.f32 %v2460_v47  ;;  %v5402_v46 = vld [vmem:[#allocation5_spill] sm:$0xff] }
 0x18a   :  { %v2074_v37 = vpop.f32.mrb[27].mxu1  ;;  %v2121_v53 = vpop.f32.mrb[32].mxu0  ;;  %v2904_v22 = vmul.f32 %v3944_v8, %v5101_v32  ;;  %3965 = vtanh.f32 %v2386_v40  ;;  %v2411_v39 = vadd.f32 %v4946_v31, %v2072_v24  ;;  %v5404_v8 = vld [vmem:[#allocation23_spill] sm:$0xff] }
 0x18b   :  { %v3946_v4 = vpop.eup %3945  ;;  %v2412_v17 = vadd.f32 %v4946_v31, %v2074_v37  ;;  %v2123_v26 = vpop.f32.mrb[33].mxu0  ;;  %v2861_v63 = vadd.f32 %v2857_v45, %v2837_v62  ;;  %v2884_v7 = vadd.f32 %v2880_v54, %v2860_v15  ;;  %3967 = vtanh.f32 %v2387_v51 }
 0x18c   :  { %v3948_v9 = vpop.eup %3947  ;;  %v2881_v30 = vmul.f32 %v3946_v4, %v5087_v5  ;;  %v2125_v49 = vpop.f32.mrb[34].mxu0  ;;  %3969 = vtanh.f32 %v2411_v39  ;;  %v2388_v32 = vadd.f32 %v4939_v28, %v2121_v53  ;;  %v2389_v6 = vadd.f32 %v4939_v28, %v2123_v26  ;;  %v5401_v5 = vld [vmem:[#allocation9_spill] sm:$0xff]  ;;  %v5405_v53 = vld [vmem:[#allocation7_spill] sm:$0xff] }
 0x18d   :  { %v5230_v41 = vpop.permute.xlu0 %3017  ;;  %v3950_v20 = vpop.eup %3949  ;;  %v2834_v23 = vmul.f32 %v3948_v9, %v5400_v33  ;;  %v5237_v50 = vadd.f32 %v2904_v22, %v2884_v7  ;;  %3971 = vtanh.f32 %v2412_v17  ;;  %v2413_v35 = vadd.f32 %v4946_v31, %v2125_v49  ;;  %v5406_v9 = vld [vmem:[#allocation10_spill] sm:$0xff] }
 0x18e   :  { %v2127_v12 = vpop.f32.mrb[35].mxu0  ;;  %v5235_v29 = vpop.permute.xlu1 %3069  ;;  %v2885_v56 = vadd.f32 %v2881_v30, %v2861_v63  ;;  %v2905_v1 = vmul.f32 %v3950_v20, %v5401_v5  ;;  %3973 = vtanh.f32 %v2388_v32  ;;  %v5407_v32 = vld [vmem:[#allocation8_spill] sm:$0xff] }
 0x18f   :  { %v3952_v3 = vpop.eup %3951  ;;  %v2838_v34 = vadd.f32 %v2834_v23, %v2814_v60  ;;  %v2078_v42 = vpop.f32.mrb[28].mxu1  ;;  %3975 = vtanh.f32 %v2389_v6  ;;  %v2414_v60 = vadd.f32 %v4946_v31, %v2127_v12 }
 0x190   :  { %v3954_v21 = vpop.eup %3953  ;;  %v2858_v47 = vmul.f32 %v3952_v3, %v5402_v46  ;;  %v5242_v55 = vadd.f32 %v2905_v1, %v2885_v56  ;;  %v2436_v45 = vadd.f32 %v4641_v10, %v2078_v42  ;;  %v2080_v40 = vpop.f32.mrb[29].mxu1  ;;  %3977 = vtanh.f32 %v2413_v35  ;;  %v5408_v35 = vld [vmem:[#allocation11_spill] sm:$0xff] }
 0x191   :  { %v3956_v59 = vpop.eup %3955  ;;  %v2835_v36 = vmul.f32 %v3954_v21, %v5403_v38  ;;  %v2082_v62 = vpop.f32.mrb[30].mxu1  ;;  %v2437_v22 = vadd.f32 %v4641_v10, %v2080_v40 }
 0x192   :  { %v3958_v51 = vpop.eup %3957  ;;  %v2862_v24 = vadd.f32 %v2858_v47, %v2838_v34  ;;  %v2859_v15 = vmul.f32 %v3956_v59, %v5404_v8  ;;  %v5248_v11 = vpop.permute.xlu0 %3037  ;;  %3979 = vtanh.f32 %v2436_v45  ;;  %v2461_v7 = vadd.f32 %v4654_v13, %v2082_v62 }
 0x193   :  { %v3960_v54 = vpop.eup %3959  ;;  %v2839_v37 = vadd.f32 %v2835_v36, %v5215_v44  ;;  %v2882_v4 = vmul.f32 %v3958_v51, %v5405_v53  ;;  %v2084_v39 = vpop.f32.mrb[31].mxu1  ;;  %3981 = vtanh.f32 %v2414_v60 }
 0x194   :  { %v2131_v17 = vpop.f32.mrb[36].mxu0  ;;  %v3962_v26 = vpop.eup %3961  ;;  %v2906_v63 = vmul.f32 %v3960_v54, %v5406_v9  ;;  %v2462_v30 = vadd.f32 %v4654_v13, %v2084_v39  ;;  %3983 = vtanh.f32 %v2437_v22  ;;  %v5409_v54 = vld [vmem:[#allocation14_spill] sm:$0xff] }
 0x195   :  { %v2133_v49 = vpop.f32.mrb[37].mxu0  ;;  %v5256_v20 = vpop.permute.xlu1 %3089  ;;  %v2863_v44 = vadd.f32 %v2859_v15, %v2839_v37  ;;  %v2886_v23 = vadd.f32 %v2882_v4, %v2862_v24  ;;  %v2883_v6 = vmul.f32 %v3962_v26, %v5407_v32  ;;  %3985 = vtanh.f32 %v2461_v7  ;;  %v5410_v26 = vld [vmem:[#allocation20_spill] sm:$0xff] }
 0x196   :  { %v3964_v33 = vpop.eup %3963  ;;  %v2135_v12 = vpop.f32.mrb[38].mxu0  ;;  %v2438_v5 = vadd.f32 %v4641_v10, %v2131_v17  ;;  %v2439_v1 = vadd.f32 %v4641_v10, %v2133_v49  ;;  %3987 = vtanh.f32 %v2462_v30 }
 0x197   :  { %v3966_v3 = vpop.eup %3965  ;;  %v2907_v56 = vmul.f32 %v3964_v33, %v5116_v43  ;;  %v2137_v21 = vpop.f32.mrb[39].mxu0  ;;  %v2910_v46 = vadd.f32 %v2906_v63, %v2886_v23  ;;  %v2887_v47 = vadd.f32 %v2883_v6, %v2863_v44  ;;  %v2463_v36 = vadd.f32 %v4654_v13, %v2135_v12 }
 0x198   :  { %v3968_v34 = vpop.eup %3967  ;;  %v2928_v42 = vmul.f32 %v3966_v3, %v5408_v35  ;;  %3989 = vtanh.f32 %v2438_v5  ;;  %v2464_v43 = vadd.f32 %v4654_v13, %v2137_v21  ;;  %v2174_v45 = vpop.f32.mrb[32].mxu1  ;;  %v5412_v5 = vld [vmem:[#allocation12_spill] sm:$0xff] }
 0x199   :  { %v3970_v59 = vpop.eup %3969  ;;  %v2952_v38 = vmul.f32 %v3968_v34, %v5145_v58  ;;  %v5266_v40 = vpop.permute.xlu0 %3057  ;;  %v5268_v24 = vadd.f32 %v2907_v56, %v2887_v47  ;;  %3991 = vtanh.f32 %v2439_v1  ;;  %v2390_v37 = vadd.f32 %v4939_v28, %v2174_v45  ;;  %v5413_v45 = vld [vmem:[#allocation15_spill] sm:$0xff] }
 0x19a   :  { %v3972_v51 = vpop.eup %3971  ;;  %v2932_v8 = vadd.f32 %v2928_v42, %v5237_v50  ;;  %v2929_v15 = vmul.f32 %v3970_v59, %v5129_v25  ;;  %v2176_v60 = vpop.f32.mrb[33].mxu1  ;;  %3993 = vtanh.f32 %v2463_v36 }
 0x19b   :  { %v3974_v62 = vpop.eup %3973  ;;  %v2953_v58 = vmul.f32 %v3972_v51, %v5409_v54  ;;  %v2391_v53 = vadd.f32 %v4939_v28, %v2176_v60  ;;  %v2178_v4 = vpop.f32.mrb[34].mxu1  ;;  %3995 = vtanh.f32 %v2464_v43  ;;  %v5414_v54 = vld [vmem:[#allocation13_spill] sm:$0xff] }
 0x19c   :  { %v5275_v22 = vpop.permute.xlu1 %3109  ;;  %v3976_v39 = vpop.eup %3975  ;;  %v2933_v17 = vadd.f32 %v2929_v15, %v5242_v55  ;;  %v2976_v50 = vmul.f32 %v3974_v62, %v5410_v26  ;;  %v2415_v25 = vadd.f32 %v4946_v31, %v2178_v4  ;;  %3997 = vtanh.f32 %v2390_v37  ;;  %v5411_v55 = vld [vmem:[#allocation22_spill] sm:$0xff] }
 0x19d   :  { %v2180_v9 = vpop.f32.mrb[35].mxu1  ;;  %v2227_v63 = vpop.f32.mrb[40].mxu0  ;;  %v2956_v33 = vadd.f32 %v2952_v38, %v2932_v8  ;;  %3999 = vtanh.f32 %v2391_v53  ;;  %v3000_v12 = vmul.f32 %v3976_v39, %v5411_v55 }
 0x19e   :  { %v3978_v7 = vpop.eup %3977  ;;  %v2416_v30 = vadd.f32 %v4946_v31, %v2180_v9  ;;  %v2392_v49 = vadd.f32 %v4939_v28, %v2227_v63  ;;  %v2229_v44 = vpop.f32.mrb[41].mxu0  ;;  %v2957_v32 = vadd.f32 %v2953_v58, %v2933_v17  ;;  %4001 = vtanh.f32 %v2415_v25  ;;  %v5415_v63 = vld [vmem:[#allocation21_spill] sm:$0xff] }
 0x19f   :  { %v3980_v23 = vpop.eup %3979  ;;  %v2977_v6 = vmul.f32 %v3978_v7, %v5177_v19  ;;  %v2231_v3 = vpop.f32.mrb[42].mxu0  ;;  %v2980_v21 = vadd.f32 %v2976_v50, %v2956_v33  ;;  %v2393_v34 = vadd.f32 %v4939_v28, %v2229_v44 }
 0x1a0   :  { %v3982_v56 = vpop.eup %3981  ;;  %v2930_v1 = vmul.f32 %v3980_v23, %v5412_v5  ;;  %v2233_v47 = vpop.f32.mrb[43].mxu0  ;;  %4003 = vtanh.f32 %v2416_v30  ;;  %v2417_v19 = vadd.f32 %v4946_v31, %v2231_v3  ;;  %v5416_v23 = vld [vmem:[#allocation25_spill] sm:$0xff] }
 0x1a1   :  { %v5286_v35 = vpop.permute.xlu0 %3065  ;;  %v3984_v42 = vpop.eup %3983  ;;  %v3001_v59 = vmul.f32 %v3982_v56, %v5194_v61  ;;  %v2418_v38 = vadd.f32 %v4946_v31, %v2233_v47  ;;  %4005 = vtanh.f32 %v2392_v49  ;;  %v3004_v8 = vadd.f32 %v3000_v12, %v2980_v21 }
 0x1a2   :  { %v3986_v36 = vpop.eup %3985  ;;  %v2934_v43 = vadd.f32 %v2930_v1, %v2910_v46  ;;  %v2954_v51 = vmul.f32 %v3984_v42, %v5413_v45  ;;  %v2184_v15 = vpop.f32.mrb[36].mxu1  ;;  %4007 = vtanh.f32 %v2393_v34  ;;  %v2981_v53 = vadd.f32 %v2977_v6, %v2957_v32 }
 0x1a3   :  { %v5292_v60 = vpop.permute.xlu1 %3093  ;;  %v3988_v62 = vpop.eup %3987  ;;  %v2931_v58 = vmul.f32 %v3986_v36, %v5414_v54  ;;  %v2440_v61 = vadd.f32 %v4641_v10, %v2184_v15  ;;  %4009 = vtanh.f32 %v2417_v19 }
 0x1a4   :  { %v2186_v37 = vpop.f32.mrb[37].mxu1  ;;  %v3990_v4 = vpop.eup %3989  ;;  %v2958_v39 = vadd.f32 %v2954_v51, %v2934_v43  ;;  %v2955_v17 = vmul.f32 %v3988_v62, %v5163_v16 }
 0x1a5   :  { %v2441_v46 = vadd.f32 %v4641_v10, %v2186_v37  ;;  %v2188_v26 = vpop.f32.mrb[38].mxu1  ;;  %v5298_v50 = vpop.permute.xlu0 %3085  ;;  %v2935_v9 = vadd.f32 %v2931_v58, %v5268_v24  ;;  %v2978_v7 = vmul.f32 %v3990_v4, %v5415_v63  ;;  %4011 = vtanh.f32 %v2440_v61  ;;  %v5417_v24 = vld [vmem:[#allocation24_spill] sm:$0xff] }
 0x1a6   :  { %v3992_v25 = vpop.eup %3991  ;;  %v2465_v30 = vadd.f32 %v4654_v13, %v2188_v26  ;;  %v2190_v49 = vpop.f32.mrb[39].mxu1  ;;  %4013 = vtanh.f32 %v2418_v38 }
 0x1a7   :  { %v2237_v33 = vpop.f32.mrb[44].mxu0  ;;  %v3994_v44 = vpop.eup %3993  ;;  %v3002_v32 = vmul.f32 %v3992_v25, %v5416_v23  ;;  %v2466_v16 = vadd.f32 %v4654_v13, %v2190_v49  ;;  %v2959_v3 = vadd.f32 %v2955_v17, %v2935_v9  ;;  %v2982_v56 = vadd.f32 %v2978_v7, %v2958_v39  ;;  %v5418_v39 = vld [vmem:[#allocation26_spill] sm:$0xff] }
 0x1a8   :  { %v2442_v6 = vadd.f32 %v4641_v10, %v2237_v33  ;;  %v2239_v55 = vpop.f32.mrb[45].mxu0  ;;  %v3996_v12 = vpop.eup %3995  ;;  %v2979_v5 = vmul.f32 %v3994_v44, %v5417_v24  ;;  %4015 = vtanh.f32 %v2441_v46 }
 0x1a9   :  { %v2241_v1 = vpop.f32.mrb[46].mxu0  ;;  %v3998_v21 = vpop.eup %3997  ;;  %v3003_v34 = vmul.f32 %v3996_v12, %v5124_v18  ;;  %4017 = vtanh.f32 %v2465_v30  ;;  %v2443_v47 = vadd.f32 %v4641_v10, %v2239_v55  ;;  %v5312_v43 = vadd.f32 %v3002_v32, %v2982_v56 }
 0x1aa   :  { %v2467_v42 = vadd.f32 %v4654_v13, %v2241_v1  ;;  %v2243_v19 = vpop.f32.mrb[47].mxu0  ;;  %v5310_v38 = vpop.permute.xlu1 %3129  ;;  %v2983_v45 = vadd.f32 %v2979_v5, %v2959_v3  ;;  %v3024_v51 = vmul.f32 %v3998_v21, %v5211_v27  ;;  %4019 = vtanh.f32 %v2466_v16  ;;  %v5419_v5 = vld [vmem:[#allocation16_spill] sm:$0xff]  ;;  %v5420_v21 = vld [vmem:[#allocation17_spill] sm:$0xff] }
 0x1ab   :  { %v4000_v36 = vpop.eup %3999  ;;  %4021 = vtanh.f32 %v2442_v6  ;;  %v3005_v18 = vadd.f32 %v3001_v59, %v2981_v53  ;;  %v2468_v54 = vadd.f32 %v4654_v13, %v2243_v19  ;;  %v2280_v58 = vpop.f32.mrb[40].mxu1 }
 0x1ac   :  { %v4002_v15 = vpop.eup %4001  ;;  %v3048_v62 = vmul.f32 %v4000_v36, %v5139_v52  ;;  %v5317_v37 = vadd.f32 %v3003_v34, %v2983_v45  ;;  %v3028_v4 = vadd.f32 %v3024_v51, %v3004_v8  ;;  %4023 = vtanh.f32 %v2443_v47  ;;  %v2282_v46 = vpop.f32.mrb[41].mxu1 }
 0x1ad   :  { %v4004_v61 = vpop.eup %4003  ;;  %v3025_v17 = vmul.f32 %v4002_v15, %v5418_v39  ;;  %v5320_v26 = vpop.permute.xlu0 %3105  ;;  %4025 = vtanh.f32 %v2467_v42  ;;  %v2394_v52 = vadd.f32 %v4939_v28, %v2280_v58  ;;  %v2395_v59 = vadd.f32 %v4939_v28, %v2282_v46  ;;  %v5422_v39 = vld [vmem:[#allocation19_spill] sm:$0xff] }
 0x1ae   :  { %v4006_v27 = vpop.eup %4005  ;;  %v3049_v25 = vmul.f32 %v4004_v61, %v5248_v11  ;;  %v2284_v53 = vpop.f32.mrb[42].mxu1  ;;  %v3052_v63 = vadd.f32 %v3048_v62, %v3028_v4  ;;  %4027 = vtanh.f32 %v2468_v54  ;;  %v5421_v62 = vld [vmem:[#allocation18_spill] sm:$0xff] }
 0x1af   :  { %v4008_v9 = vpop.eup %4007  ;;  %v3072_v7 = vmul.f32 %v4006_v27, %v5266_v40  ;;  %v3029_v8 = vadd.f32 %v3025_v17, %v3005_v18  ;;  %v2286_v30 = vpop.f32.mrb[43].mxu1  ;;  %4029 = vtanh.f32 %v2394_v52  ;;  %v2419_v44 = vadd.f32 %v4946_v31, %v2284_v53 }
 0x1b0   :  { %v3437_v49 = vpop.f32.mrb[48].mxu0  ;;  %v4010_v33 = vpop.eup %4009  ;;  %v2420_v23 = vadd.f32 %v4946_v31, %v2286_v30  ;;  %v3096_v11 = vmul.f32 %v4008_v9, %v5219_v14  ;;  %4031 = vtanh.f32 %v2395_v59 }
 0x1b1   :  { %v5329_v32 = vpop.permute.xlu1 %3117  ;;  %v2333_v16 = vpop.f32.mrb[49].mxu0  ;;  %v3076_v55 = vadd.f32 %v3072_v7, %v3052_v63  ;;  %v3053_v12 = vadd.f32 %v3049_v25, %v3029_v8  ;;  %v3073_v40 = vmul.f32 %v4010_v33, %v5186_v0  ;;  %4033 = vtanh.f32 %v2419_v44 }
 0x1b2   :  { %v4012_v6 = vpop.eup %4011  ;;  %v3438_v3 = vpop.f32.mrb[50].mxu0  ;;  %v2342_v1 = vadd.f32 %v3437_v49, %v5419_v5  ;;  %v2334_v34 = vadd.f32 %v2333_v16, %v5420_v21  ;;  %4035 = vtanh.f32 %v2420_v23 }
 0x1b3   :  { %v4014_v56 = vpop.eup %4013  ;;  %v3026_v24 = vmul.f32 %v4012_v6, %v5230_v41  ;;  %v2336_v47 = vpop.f32.mrb[51].mxu0  ;;  %v3077_v42 = vadd.f32 %v3073_v40, %v3053_v12  ;;  %v3100_v36 = vadd.f32 %v3096_v11, %v3076_v55  ;;  %v2345_v18 = vadd.f32 %v3438_v3, %v5421_v62 }
 0x1b4   :  { %v4016_v14 = vpop.eup %4015  ;;  %v3097_v19 = vmul.f32 %v4014_v56, %v5298_v50  ;;  %v5336_v45 = vpop.permute.xlu0 %3113  ;;  %v2446_v15 = vadd.f32 %v4641_v10, %v2342_v1  ;;  %v2396_v41 = vadd.f32 %v4939_v28, %v2334_v34  ;;  %v2337_v17 = vadd.f32 %v2336_v47, %v5422_v39 }
 0x1b5   :  { %v4018_v0 = vpop.eup %4017  ;;  %v3050_v51 = vmul.f32 %v4016_v14, %v5169_v2  ;;  %v2290_v54 = vpop.f32.mrb[44].mxu1  ;;  %v3030_v9 = vadd.f32 %v3026_v24, %v5312_v43  ;;  %v2471_v43 = vadd.f32 %v4654_v13, %v2345_v18 }
 0x1b6   :  { %v4020_v58 = vpop.eup %4019  ;;  %v3027_v61 = vmul.f32 %v4018_v0, %v5154_v48  ;;  %v3101_v4 = vadd.f32 %v3097_v19, %v3077_v42  ;;  %v2444_v50 = vadd.f32 %v4641_v10, %v2290_v54  ;;  %v2292_v46 = vpop.f32.mrb[45].mxu1  ;;  %4037 = vtanh.f32 %v2396_v41 }
 0x1b7   :  { %v4022_v27 = vpop.eup %4021  ;;  %v3051_v25 = vmul.f32 %v4020_v58, %v5204_v57  ;;  %v2445_v2 = vadd.f32 %v4641_v10, %v2292_v46  ;;  %v3138_v52 = vpop.permute.xlu1 %3137  ;;  %v2421_v53 = vadd.f32 %v4946_v31, %v2337_v17  ;;  %4039 = vtanh.f32 %v2446_v15 }
 0x1b8   :  { %v2294_v59 = vpop.f32.mrb[46].mxu1  ;;  %v4024_v28 = vpop.eup %4023  ;;  %v3074_v48 = vmul.f32 %v4022_v27, %v5286_v35  ;;  %4041 = vtanh.f32 %v2444_v50  ;;  %v3054_v10 = vadd.f32 %v3050_v51, %v3030_v9  ;;  %v3031_v44 = vadd.f32 %v3027_v61, %v5317_v37 }
 0x1b9   :  { %v2296_v63 = vpop.f32.mrb[47].mxu1  ;;  %v4026_v7 = vpop.eup %4025  ;;  %v3098_v8 = vmul.f32 %v4024_v28, %v5256_v20  ;;  %v2469_v30 = vadd.f32 %v4654_v13, %v2294_v59  ;;  %4043 = vtanh.f32 %v2421_v53 }
 0x1ba   :  { %v4028_v57 = vpop.eup %4027  ;;  %v2470_v49 = vadd.f32 %v4654_v13, %v2296_v63  ;;  %v3134_v33 = vpop.permute.xlu0 %3133  ;;  %v3075_v35 = vmul.f32 %v4026_v7, %v5235_v29  ;;  %4045 = vtanh.f32 %v2445_v2  ;;  %v3078_v20 = vadd.f32 %v3074_v48, %v3054_v10 }
 0x1bb   :  { %v4030_v31 = vpop.eup %4029  ;;  %v3055_v16 = vadd.f32 %v3051_v25, %v3031_v44  ;;  %4047 = vtanh.f32 %v2469_v30  ;;  %v3158_v12 = vpop.permute.xlu1 %3157  ;;  %v3099_v40 = vmul.f32 %v4028_v57, %v5292_v60 }
 0x1bc   :  { %v4032_v23 = vpop.eup %4031  ;;  %v3120_v11 = vmul.f32 %v4030_v31, %v5320_v26  ;;  %v3102_v56 = vadd.f32 %v3098_v8, %v3078_v20  ;;  %4049 = vtanh.f32 %v2470_v49 }
 0x1bd   :  { %v4034_v6 = vpop.eup %4033  ;;  %v3144_v55 = vmul.f32 %v4032_v23, %v5310_v38  ;;  %4051 = vtanh.f32 %v2471_v43  ;;  %v3079_v24 = vadd.f32 %v3075_v35, %v3055_v16 }
 0x1be   :  { %v4036_v37 = vpop.eup %4035  ;;  %v3124_v3 = vadd.f32 %v3120_v11, %v3100_v36  ;;  %v3121_v13 = vmul.f32 %v4034_v6, %v5275_v22  ;;  %v3154_v5 = vpop.permute.xlu0 %3153 }
 0x1bf   :  { %v3145_v29 = vmul.f32 %v4036_v37, %v3134_v33  ;;  %v3103_v21 = vadd.f32 %v3099_v40, %v3079_v24  ;;  %v3142_v42 = vpop.permute.xlu1 %3141 }
 0x1c0   :  { %v3125_v26 = vadd.f32 %v3121_v13, %v3101_v4  ;;  %v3148_v1 = vadd.f32 %v3144_v55, %v3124_v3  ;;  %v4038_v34 = vpop.eup %4037 }
 0x1c1   :  { %v4040_v38 = vpop.eup %4039  ;;  %v3168_v14 = vmul.f32 %v4038_v34, %v3154_v5 }
 0x1c2   :  { %v3149_v47 = vadd.f32 %v3145_v29, %v3125_v26  ;;  %v4042_v19 = vpop.eup %4041  ;;  %v3162_v22 = vpop.permute.xlu0 %3161 }
 0x1c3   :  { %v4044_v60 = vpop.eup %4043  ;;  %v3122_v36 = vmul.f32 %v4042_v19, %v5336_v45  ;;  %v3172_v0 = vadd.f32 %v3168_v14, %v3148_v1  ;;  %v3170_v17 = vmul.f32 %v4040_v38, %v3162_v22  ;;  %v3166_v46 = vpop.permute.xlu1 %3165 }
 0x1c4   :  { %v4046_v51 = vpop.eup %4045  ;;  %v3169_v15 = vmul.f32 %v4044_v60, %v3158_v12 }
 0x1c5   :  { %v4048_v41 = vpop.eup %4047  ;;  %v3126_v62 = vadd.f32 %v3122_v36, %v3102_v56  ;;  %v3146_v18 = vmul.f32 %v4046_v51, %v3138_v52 }
 0x1c6   :  { %v4050_v54 = vpop.eup %4049  ;;  %v3173_v58 = vadd.f32 %v3169_v15, %v3149_v47  ;;  %v3123_v61 = vmul.f32 %v4048_v41, %v5329_v32  ;;  %v3186_v32 = vstv %s5373_s5 }
 0x1c7   :  { %v4052_v4 = vpop.eup %4051  ;;  %v3150_v50 = vadd.f32 %v3146_v18, %v3126_v62  ;;  %v3147_v39 = vmul.f32 %v4050_v54, %v3142_v42 }
 0x1c8   :  { %v3176_v27 = vadd.f32 %v3173_v58, %v3172_v0  ;;  %v3127_v25 = vadd.f32 %v3123_v61, %v3103_v21  ;;  %v3171_v59 = vmul.f32 %v4052_v4, %v3166_v46 }
 0x1c9   :  { %v3174_v2 = vadd.f32 %v3170_v17, %v3150_v50 }
 0x1ca   :  { %v3151_v45 = vadd.f32 %v3147_v39, %v3127_v25 }
 0x1cb   :  { %v3177_v28 = vadd.f32 %v3176_v27, %v3174_v2 }
 0x1cc   :  { %v3175_v53 = vadd.f32 %v3171_v59, %v3151_v45 }
 0x1ce   :  { %v3178_v9 = vadd.f32 %v3177_v28, %v3175_v53 }
 0x1d0   :  { %v3179_v48 = vrot.slane %v3178_v9, 4 }
 0x1d2   :  { %v3180_v63 = vadd.f32 %v3179_v48, %v3178_v9 }
 0x1d4   :  { %v3181_v52 = vrot.slane %v3180_v63, 2 }
 0x1d6   :  { %v3182_v7 = vadd.f32 %v3181_v52, %v3180_v63 }
 0x1d8   :  { %v3183_v8 = vrot.slane %v3182_v7, 1 }
 0x1da   :  { %v3184_v30 = vadd.f32 %v3183_v8, %v3182_v7 }
 0x1dc   :  { %v3187_v57 = vadd.f32 %v3186_v32, %v3184_v30 }
 0x1de   :  { %v3188_v10 = vand.u32 2147483647, %v3187_v57  ;;  %vm3192_vm1 = vcmp.ge.f32.partialorder %v3187_v57, 0.0 }
 0x1e0   :  { %v3189_v49 = vsub.f32 0.0, %v3188_v10 }
 0x1e2   :  { %v3190_v33 = vmul.f32 1.442695, %v3189_v49 }
 0x1e4   :  { %4053 = vpow2.f32 %v3190_v33 }
 0x1ee   :  { %v4054_v44 = vpop.eup %4053 }
 0x1ef   :  { %v3193_v31 = vadd.f32 1.0, %v4054_v44 }
 0x1f1   :  { %4055 = vrcp.f32 %v3193_v31 }
 0x1fb   :  { %v4056_v43 = vpop.eup %4055 }
 0x1fc   :  { %v3196_v35 = vmul.f32 %v4056_v43, %v4054_v44 }
 0x1fe   :  { %v3197_v23 = vsel %vm3192_vm1, %v4056_v43, %v3196_v35 }
 0x1ff   :  { %3198 = vst [vmem:[%s5374_s6] sm:$0x1] %v3197_v23 }

</bundles_post_ra>
